<compile_context>
chip_gen: v7x
topology: tpu7x:2x2x1
jax: 0.10.0
libtpu: 0.0.40
codegen_flags: <defaults>
</compile_context>

<pallas_src>
import functools
from typing import NamedTuple, Tuple

import jax
import jax.numpy as jnp
from jax.experimental import pallas as pl
from jax.experimental.pallas import tpu as pltpu

_LANE = 128      # v5e MXU / lane width
_MXU_TILE = 256  # v6e / v7x MXU tile
_SUBLANE = 8


def _round_up(n: int, m: int) -> int:
    return ((n + m - 1) // m) * m


def _pad_feature(d: int) -> int:
    """Lane-dense feature padding: 128-multiple, 256-multiple once >=256."""
    p = _round_up(d, _LANE)
    return _round_up(d, _MXU_TILE) if p >= _MXU_TILE else p


# ----------------------------------------------------------------------------
# One-time parameter preparation (hoisted out of the forward path).
# ----------------------------------------------------------------------------
class PaddedMLP(NamedTuple):
    weights: Tuple[jax.Array, ...]   # each [d_i_pad, d_{i+1}_pad]
    biases: Tuple[jax.Array, ...]    # each [1, d_{i+1}_pad]
    dims: Tuple[int, ...]            # unpadded [d0, d1, ..., dL]
    dims_pad: Tuple[int, ...]        # padded   [d0, d1, ..., dL]


def pad_mlp_params(params, weight_dtype=None) -> PaddedMLP:
    """Pads every feature axis to lane/MXU-friendly sizes. Call once, reuse."""
    in_dim = params[0][0].shape[0]
    dims = [in_dim] + [w.shape[1] for w, _ in params]
    dims_pad = [_pad_feature(d) for d in dims]
    ws, bs = [], []
    for i, (w, b) in enumerate(params):
        if weight_dtype is not None:
            w = w.astype(weight_dtype)          # bias stays f32 (added post-MXU)
        w_p = jnp.pad(w, ((0, dims_pad[i] - dims[i]),
                          (0, dims_pad[i + 1] - dims[i + 1])))
        b_p = jnp.pad(b, ((0, 0), (0, dims_pad[i + 1] - dims[i + 1])))
        ws.append(w_p)
        bs.append(b_p)
    return PaddedMLP(tuple(ws), tuple(bs), tuple(dims), tuple(dims_pad))


# ----------------------------------------------------------------------------
# Kernel: all layers fused, intermediates stay in vregs/VMEM.
# ----------------------------------------------------------------------------
def _fused_mlp_kernel(x_ref, *refs, num_layers: int):
    """refs = (w0, b0, ..., w_{L-1}, b_{L-1}, out_ref, penult_ref)."""
    wb = refs[: 2 * num_layers]
    out_ref, pen_ref = refs[2 * num_layers], refs[2 * num_layers + 1]

    h = x_ref[...]
    for i in range(num_layers):
        w = wb[2 * i][...]
        b = wb[2 * i + 1][...].astype(jnp.float32)
        # MXU matmul with f32 accumulation; feed the MXU in the weights' dtype
        # (bf16 when pad_mlp_params was given weight_dtype=bf16).
        y = jnp.dot(h.astype(w.dtype), w, preferred_element_type=jnp.float32) + b
        if i < num_layers - 1:
            y = jnp.maximum(y, 0.0)              # ReLU on all but the last layer
        if i == num_layers - 2:
            pen_ref[...] = y.astype(pen_ref.dtype)
        h = y
    out_ref[...] = h.astype(out_ref.dtype)


# ----------------------------------------------------------------------------
# Row-tile selection: VMEM-aware cap, >=2 grid steps for v7x megacore,
# minimal zero-row padding.
# ----------------------------------------------------------------------------
def _choose_tm(M: int, dims_pad, weight_bytes: int, act_itemsize: int) -> int:
    max_dim = max(dims_pad)
    d0, dl, dp = dims_pad[0], dims_pad[-1], dims_pad[-2]

    def act_bytes(tm):
        io = 2 * tm * d0 * act_itemsize + 2 * tm * (dl + dp) * act_itemsize
        live = 3 * tm * max_dim * 4              # f32 intermediates
        return io + live

    # Budget against the tightest generation (v7x: 64 MiB per TensorCore).
    budget = int(0.75 * (64 << 20)) - weight_bytes
    tm_cap = 512
    while tm_cap > 64 and act_bytes(tm_cap) > budget:
        tm_cap //= 2

    # Balance rows over >=2 grid steps (both v7x cores busy), minimise padding.
    n_steps = max(2, pl.cdiv(M, tm_cap)) if M > _SUBLANE else 1
    tm = min(tm_cap, _round_up(pl.cdiv(M, n_steps), _SUBLANE))
    return max(tm, _SUBLANE)


# ----------------------------------------------------------------------------
# Wrapper.
# ----------------------------------------------------------------------------
def fused_mlp(x2d, padded: PaddedMLP):
    """x2d: [M, in_dim]. Returns (final [M, out_dim], penultimate [M, hid_dim])."""
    num_layers = len(padded.weights)
    assert num_layers >= 2, "MLP.forward returns intermediate[-2]; needs >= 2 layers"

    M, in_dim = x2d.shape
    dims, dims_pad = padded.dims, padded.dims_pad
    assert in_dim == dims[0]
    dtype = x2d.dtype
    itemsize = jnp.dtype(dtype).itemsize

    weight_bytes = sum(int(w.size) * w.dtype.itemsize for w in padded.weights)
    weight_bytes += sum(int(b.size) * b.dtype.itemsize for b in padded.biases)

    TM = _choose_tm(M, dims_pad, weight_bytes, itemsize)
    M_pad = _round_up(M, TM)
    grid = (M_pad // TM,)
    out_pad, pen_pad = dims_pad[-1], dims_pad[-2]

    # Single fused pad on x: rows + features in one HBM copy.
    x_p = jnp.pad(x2d, ((0, M_pad - M), (0, dims_pad[0] - dims[0])))

    flat_args = [x_p]
    for w, b in zip(padded.weights, padded.biases):
        flat_args += [w, b]

    # Explicit VMEM budget: resident weights (single-buffered) + double-buffered
    # I/O tiles + ~3 live f32 intermediates, with ~20% headroom.
    act_bytes = (2 * TM * dims_pad[0] * itemsize
                 + 2 * TM * (out_pad + pen_pad) * itemsize
                 + 3 * TM * max(dims_pad) * 4)
    vmem_limit = int(1.2 * (weight_bytes + act_bytes)) + (2 << 20)
    vmem_limit = min(max(vmem_limit, 32 << 20), 128 << 20)

    flops = 2 * M_pad * sum(dims_pad[i] * dims_pad[i + 1] for i in range(num_layers))
    bytes_accessed = (int(x_p.size) * itemsize + weight_bytes
                      + M_pad * (out_pad + pen_pad) * itemsize)
    cost = pl.CostEstimate(flops=flops, transcendentals=0,
                           bytes_accessed=bytes_accessed)

    kernel = functools.partial(_fused_mlp_kernel, num_layers=num_layers)

    def build(single_buffer_weights: bool):
        def resident_spec(shape):
            if single_buffer_weights:
                # Constant index_map -> second pipeline buffer is dead weight.
                return pl.BlockSpec(shape, lambda i: (0, 0),
                                    pipeline_mode=pl.Buffered(1))
            return pl.BlockSpec(shape, lambda i: (0, 0))

        in_specs = [pl.BlockSpec((TM, dims_pad[0]), lambda i: (i, 0))]
        for w, b in zip(padded.weights, padded.biases):
            in_specs.append(resident_spec(w.shape))
            in_specs.append(resident_spec(b.shape))

        return pl.pallas_call(
            kernel,
            out_shape=(
                jax.ShapeDtypeStruct((M_pad, out_pad), dtype),
                jax.ShapeDtypeStruct((M_pad, pen_pad), dtype),
            ),
            grid=grid,
            in_specs=in_specs,
            out_specs=(
                pl.BlockSpec((TM, out_pad), lambda i: (i, 0)),
                pl.BlockSpec((TM, pen_pad), lambda i: (i, 0)),
            ),
            compiler_params=pltpu.CompilerParams(
                dimension_semantics=("parallel",),   # rows independent
                vmem_limit_bytes=vmem_limit,
            ),
            cost_estimate=cost,
        )

    try:
        final_p, pen_p = build(True)(*flat_args)
    except Exception:
        # Fallback for jax builds that reject Buffered(1) on resident inputs.
        final_p, pen_p = build(False)(*flat_args)

    return final_p[:M, : dims[-1]], pen_p[:M, : dims[-2]]


def init_mlp_params(key, input_dim, hidden_dim, output_dim, num_layers):
    """Deterministic init mirroring nn.Linear default (uniform +-1/sqrt(fan_in))."""
    h = [hidden_dim] * (num_layers - 1)
    dims_in = [input_dim] + h
    dims_out = h + [output_dim]
    params = []
    for n, k in zip(dims_in, dims_out):
        key, kw, kb = jax.random.split(key, 3)
        bound = 1.0 / (n ** 0.5)
        w = jax.random.uniform(kw, (n, k), jnp.float32, -bound, bound)  # [in, out]
        b = jax.random.uniform(kb, (1, k), jnp.float32, -bound, bound)
        params.append((w, b))
    return params


def mlp_forward(x, padded: PaddedMLP):
    """Replicates MLP.forward: returns (final_output, intermediate[-2])."""
    lead_shape = x.shape[:-1]
    x2d = x.reshape(-1, x.shape[-1])
    final2d, penult2d = fused_mlp(x2d, padded)
    final = final2d.reshape(*lead_shape, final2d.shape[-1])
    penult = penult2d.reshape(*lead_shape, penult2d.shape[-1])
    return final, penult


if __name__ == "__main__":
    key = jax.random.PRNGKey(0)
    k_in, k_params = jax.random.split(key)

    # small shapes consistent with the module
    batch, seq = 2, 8
    input_dim, hidden_dim, output_dim, num_layers = 16, 32, 8, 3

    x = jax.random.normal(k_in, (batch, seq, input_dim), jnp.float32)
    params = init_mlp_params(k_params, input_dim, hidden_dim, output_dim, num_layers)

    # One-time padding (hoisted out of the forward path). For v6e/v7x one may
    # pass weight_dtype=jnp.bfloat16 here (accuracy tradeoff, not validated).
    padded = pad_mlp_params(params)

    out, penult = mlp_forward(x, padded)
    jax.block_until_ready((out, penult))

    # lightweight sanity check vs pure-JAX reference
    def ref(x, params):
        x2d = x.reshape(-1, x.shape[-1])
        inter = []
        for i, (w, b) in enumerate(params):
            y = x2d @ w + b
            if i < len(params) - 1:
                y = jnp.maximum(y, 0.0)
            inter.append(y)
            x2d = y
        return (x2d.reshape(*x.shape[:-1], x2d.shape[-1]),
                inter[-2].reshape(*x.shape[:-1], inter[-2].shape[-1]))

    r_out, r_pen = ref(x, params)
    assert out.shape == (batch, seq, output_dim)
    assert penult.shape == (batch, seq, hidden_dim)
    assert jnp.allclose(out, r_out, atol=1e-5), "final output mismatch"
    assert jnp.allclose(penult, r_pen, atol=1e-5), "penultimate output mismatch"

    print("KERNEL_OK")
</pallas_src>

<mosaic_0001>
module attributes {stable_mosaic.version = 11 : i64} {
  func.func @_fused_mlp_kernel(%arg0: i32, %arg1: memref<8x128xf32, #tpu.memory_space<vmem>>, %arg2: memref<128x128xf32, #tpu.memory_space<vmem>>, %arg3: memref<1x128xf32, #tpu.memory_space<vmem>>, %arg4: memref<128x128xf32, #tpu.memory_space<vmem>>, %arg5: memref<1x128xf32, #tpu.memory_space<vmem>>, %arg6: memref<128x128xf32, #tpu.memory_space<vmem>>, %arg7: memref<1x128xf32, #tpu.memory_space<vmem>>, %arg8: memref<8x128xf32, #tpu.memory_space<vmem>>, %arg9: memref<8x128xf32, #tpu.memory_space<vmem>>) attributes {dimension_semantics = [#tpu.dimension_semantics<parallel>], iteration_bounds = array<i64: 2>, scalar_prefetch = 0 : i64, scratch_operands = 0 : i64, tpu.core_type = #tpu.core_type<tc>, window_params = [{transform_indices = @transform_0, window_bounds = array<i64: 8, 128>}, {pipeline_mode = #tpu.pipeline_mode<synchronous>, transform_indices = @transform_1, window_bounds = array<i64: 128, 128>}, {pipeline_mode = #tpu.pipeline_mode<synchronous>, transform_indices = @transform_2, window_bounds = array<i64: 1, 128>}, {pipeline_mode = #tpu.pipeline_mode<synchronous>, transform_indices = @transform_3, window_bounds = array<i64: 128, 128>}, {pipeline_mode = #tpu.pipeline_mode<synchronous>, transform_indices = @transform_4, window_bounds = array<i64: 1, 128>}, {pipeline_mode = #tpu.pipeline_mode<synchronous>, transform_indices = @transform_5, window_bounds = array<i64: 128, 128>}, {pipeline_mode = #tpu.pipeline_mode<synchronous>, transform_indices = @transform_6, window_bounds = array<i64: 1, 128>}, {transform_indices = @transform_7, window_bounds = array<i64: 8, 128>}, {transform_indices = @transform_8, window_bounds = array<i64: 8, 128>}]} {
    %c0 = arith.constant 0 : index
    %c0_0 = arith.constant 0 : index
    %0 = vector.load %arg1[%c0, %c0_0] : memref<8x128xf32, #tpu.memory_space<vmem>>, vector<8x128xf32>
    %c0_1 = arith.constant 0 : index
    %c0_2 = arith.constant 0 : index
    %1 = vector.load %arg2[%c0_1, %c0_2] : memref<128x128xf32, #tpu.memory_space<vmem>>, vector<128x128xf32>
    %c0_3 = arith.constant 0 : index
    %c0_4 = arith.constant 0 : index
    %2 = vector.load %arg3[%c0_3, %c0_4] : memref<1x128xf32, #tpu.memory_space<vmem>>, vector<1x128xf32>
    %cst = arith.constant dense<0.000000e+00> : vector<8x128xf32>
    %3 = tpu.matmul %0, %1, %cst {dimension_numbers = #tpu.dot_dimension_numbers<[1], [0], [0], [1], [0, 0, 1, 1], [], []>} : vector<8x128xf32>, vector<128x128xf32>, vector<8x128xf32> -> vector<8x128xf32>
    %4 = vector.broadcast %2 : vector<1x128xf32> to vector<8x128xf32>
    %5 = arith.addf %3, %4 : vector<8x128xf32>
    %cst_5 = arith.constant 0.000000e+00 : f32
    %6 = vector.broadcast %cst_5 : f32 to vector<8x128xf32>
    %7 = arith.maximumf %5, %6 : vector<8x128xf32>
    %c0_6 = arith.constant 0 : index
    %c0_7 = arith.constant 0 : index
    %8 = vector.load %arg4[%c0_6, %c0_7] : memref<128x128xf32, #tpu.memory_space<vmem>>, vector<128x128xf32>
    %c0_8 = arith.constant 0 : index
    %c0_9 = arith.constant 0 : index
    %9 = vector.load %arg5[%c0_8, %c0_9] : memref<1x128xf32, #tpu.memory_space<vmem>>, vector<1x128xf32>
    %cst_10 = arith.constant dense<0.000000e+00> : vector<8x128xf32>
    %10 = tpu.matmul %7, %8, %cst_10 {dimension_numbers = #tpu.dot_dimension_numbers<[1], [0], [0], [1], [0, 0, 1, 1], [], []>} : vector<8x128xf32>, vector<128x128xf32>, vector<8x128xf32> -> vector<8x128xf32>
    %11 = vector.broadcast %9 : vector<1x128xf32> to vector<8x128xf32>
    %12 = arith.addf %10, %11 : vector<8x128xf32>
    %cst_11 = arith.constant 0.000000e+00 : f32
    %13 = vector.broadcast %cst_11 : f32 to vector<8x128xf32>
    %14 = arith.maximumf %12, %13 : vector<8x128xf32>
    %c0_12 = arith.constant 0 : index
    %c0_13 = arith.constant 0 : index
    %15 = vector.load %arg9[%c0_12, %c0_13] : memref<8x128xf32, #tpu.memory_space<vmem>>, vector<8x128xf32>
    tpu.vector_store %arg9[%c0_12, %c0_13], %14 {strides = array<i32>} : memref<8x128xf32, #tpu.memory_space<vmem>>, vector<8x128xf32>,
    %c0_14 = arith.constant 0 : index
    %c0_15 = arith.constant 0 : index
    %16 = vector.load %arg6[%c0_14, %c0_15] : memref<128x128xf32, #tpu.memory_space<vmem>>, vector<128x128xf32>
    %c0_16 = arith.constant 0 : index
    %c0_17 = arith.constant 0 : index
    %17 = vector.load %arg7[%c0_16, %c0_17] : memref<1x128xf32, #tpu.memory_space<vmem>>, vector<1x128xf32>
    %cst_18 = arith.constant dense<0.000000e+00> : vector<8x128xf32>
    %18 = tpu.matmul %14, %16, %cst_18 {dimension_numbers = #tpu.dot_dimension_numbers<[1], [0], [0], [1], [0, 0, 1, 1], [], []>} : vector<8x128xf32>, vector<128x128xf32>, vector<8x128xf32> -> vector<8x128xf32>
    %19 = vector.broadcast %17 : vector<1x128xf32> to vector<8x128xf32>
    %20 = arith.addf %18, %19 : vector<8x128xf32>
    %c0_19 = arith.constant 0 : index
    %c0_20 = arith.constant 0 : index
    %21 = vector.load %arg8[%c0_19, %c0_20] : memref<8x128xf32, #tpu.memory_space<vmem>>, vector<8x128xf32>
    tpu.vector_store %arg8[%c0_19, %c0_20], %20 {strides = array<i32>} : memref<8x128xf32, #tpu.memory_space<vmem>>, vector<8x128xf32>,
    return
  }
  func.func @transform_0(%arg0: i32) -> (i32, i32) {
    %c0_i32 = arith.constant 0 : i32
    %c0_i32_0 = arith.constant 0 : i32
    return %arg0, %c0_i32 : i32, i32
  }
  func.func @transform_1(%arg0: i32) -> (i32, i32) {
    %c0_i32 = arith.constant 0 : i32
    %c0_i32_0 = arith.constant 0 : i32
    %c0_i32_1 = arith.constant 0 : i32
    return %c0_i32, %c0_i32_0 : i32, i32
  }
  func.func @transform_2(%arg0: i32) -> (i32, i32) {
    %c0_i32 = arith.constant 0 : i32
    %c0_i32_0 = arith.constant 0 : i32
    %c0_i32_1 = arith.constant 0 : i32
    return %c0_i32, %c0_i32_0 : i32, i32
  }
  func.func @transform_3(%arg0: i32) -> (i32, i32) {
    %c0_i32 = arith.constant 0 : i32
    %c0_i32_0 = arith.constant 0 : i32
    %c0_i32_1 = arith.constant 0 : i32
    return %c0_i32, %c0_i32_0 : i32, i32
  }
  func.func @transform_4(%arg0: i32) -> (i32, i32) {
    %c0_i32 = arith.constant 0 : i32
    %c0_i32_0 = arith.constant 0 : i32
    %c0_i32_1 = arith.constant 0 : i32
    return %c0_i32, %c0_i32_0 : i32, i32
  }
  func.func @transform_5(%arg0: i32) -> (i32, i32) {
    %c0_i32 = arith.constant 0 : i32
    %c0_i32_0 = arith.constant 0 : i32
    %c0_i32_1 = arith.constant 0 : i32
    return %c0_i32, %c0_i32_0 : i32, i32
  }
  func.func @transform_6(%arg0: i32) -> (i32, i32) {
    %c0_i32 = arith.constant 0 : i32
    %c0_i32_0 = arith.constant 0 : i32
    %c0_i32_1 = arith.constant 0 : i32
    return %c0_i32, %c0_i32_0 : i32, i32
  }
  func.func @transform_7(%arg0: i32) -> (i32, i32) {
    %c0_i32 = arith.constant 0 : i32
    %c0_i32_0 = arith.constant 0 : i32
    return %arg0, %c0_i32 : i32, i32
  }
  func.func @transform_8(%arg0: i32) -> (i32, i32) {
    %c0_i32 = arith.constant 0 : i32
    %c0_i32_0 = arith.constant 0 : i32
    return %arg0, %c0_i32 : i32, i32
  }
}

module attributes {stable_mosaic.version = 11 : i64} {
  func.func @_fused_mlp_kernel(%arg0: i32, %arg1: memref<8x128xf32, #tpu.memory_space<vmem>>, %arg2: memref<128x128xf32, #tpu.memory_space<vmem>>, %arg3: memref<1x128xf32, #tpu.memory_space<vmem>>, %arg4: memref<128x128xf32, #tpu.memory_space<vmem>>, %arg5: memref<1x128xf32, #tpu.memory_space<vmem>>, %arg6: memref<128x128xf32, #tpu.memory_space<vmem>>, %arg7: memref<1x128xf32, #tpu.memory_space<vmem>>, %arg8: memref<8x128xf32, #tpu.memory_space<vmem>>, %arg9: memref<8x128xf32, #tpu.memory_space<vmem>>) attributes {dimension_semantics = [#tpu.dimension_semantics<parallel>], iteration_bounds = array<i64: 2>, scalar_prefetch = 0 : i64, scratch_operands = 0 : i64, tpu.core_type = #tpu.core_type<tc>, window_params = [{transform_indices = @transform_0, window_bounds = array<i64: 8, 128>}, {pipeline_mode = #tpu.pipeline_mode<synchronous>, transform_indices = @transform_1, window_bounds = array<i64: 128, 128>}, {pipeline_mode = #tpu.pipeline_mode<synchronous>, transform_indices = @transform_2, window_bounds = array<i64: 1, 128>}, {pipeline_mode = #tpu.pipeline_mode<synchronous>, transform_indices = @transform_3, window_bounds = array<i64: 128, 128>}, {pipeline_mode = #tpu.pipeline_mode<synchronous>, transform_indices = @transform_4, window_bounds = array<i64: 1, 128>}, {pipeline_mode = #tpu.pipeline_mode<synchronous>, transform_indices = @transform_5, window_bounds = array<i64: 128, 128>}, {pipeline_mode = #tpu.pipeline_mode<synchronous>, transform_indices = @transform_6, window_bounds = array<i64: 1, 128>}, {transform_indices = @transform_7, window_bounds = array<i64: 8, 128>}, {transform_indices = @transform_8, window_bounds = array<i64: 8, 128>}]} {
    %c0 = arith.constant 0 : index
    %c0_0 = arith.constant 0 : index
    %0 = vector.load %arg1[%c0, %c0_0] : memref<8x128xf32, #tpu.memory_space<vmem>>, vector<8x128xf32>
    %c0_1 = arith.constant 0 : index
    %c0_2 = arith.constant 0 : index
    %1 = vector.load %arg2[%c0_1, %c0_2] : memref<128x128xf32, #tpu.memory_space<vmem>>, vector<128x128xf32>
    %c0_3 = arith.constant 0 : index
    %c0_4 = arith.constant 0 : index
    %2 = vector.load %arg3[%c0_3, %c0_4] : memref<1x128xf32, #tpu.memory_space<vmem>>, vector<1x128xf32>
    %cst = arith.constant dense<0.000000e+00> : vector<8x128xf32>
    %3 = tpu.matmul %0, %1, %cst {dimension_numbers = #tpu.dot_dimension_numbers<[1], [0], [0], [1], [0, 0, 1, 1], [], []>} : vector<8x128xf32>, vector<128x128xf32>, vector<8x128xf32> -> vector<8x128xf32>
    %4 = vector.broadcast %2 : vector<1x128xf32> to vector<8x128xf32>
    %5 = arith.addf %3, %4 : vector<8x128xf32>
    %cst_5 = arith.constant 0.000000e+00 : f32
    %6 = vector.broadcast %cst_5 : f32 to vector<8x128xf32>
    %7 = arith.maximumf %5, %6 : vector<8x128xf32>
    %c0_6 = arith.constant 0 : index
    %c0_7 = arith.constant 0 : index
    %8 = vector.load %arg4[%c0_6, %c0_7] : memref<128x128xf32, #tpu.memory_space<vmem>>, vector<128x128xf32>
    %c0_8 = arith.constant 0 : index
    %c0_9 = arith.constant 0 : index
    %9 = vector.load %arg5[%c0_8, %c0_9] : memref<1x128xf32, #tpu.memory_space<vmem>>, vector<1x128xf32>
    %cst_10 = arith.constant dense<0.000000e+00> : vector<8x128xf32>
    %10 = tpu.matmul %7, %8, %cst_10 {dimension_numbers = #tpu.dot_dimension_numbers<[1], [0], [0], [1], [0, 0, 1, 1], [], []>} : vector<8x128xf32>, vector<128x128xf32>, vector<8x128xf32> -> vector<8x128xf32>
    %11 = vector.broadcast %9 : vector<1x128xf32> to vector<8x128xf32>
    %12 = arith.addf %10, %11 : vector<8x128xf32>
    %cst_11 = arith.constant 0.000000e+00 : f32
    %13 = vector.broadcast %cst_11 : f32 to vector<8x128xf32>
    %14 = arith.maximumf %12, %13 : vector<8x128xf32>
    %c0_12 = arith.constant 0 : index
    %c0_13 = arith.constant 0 : index
    %15 = vector.load %arg9[%c0_12, %c0_13] : memref<8x128xf32, #tpu.memory_space<vmem>>, vector<8x128xf32>
    tpu.vector_store %arg9[%c0_12, %c0_13], %14 {strides = array<i32>} : memref<8x128xf32, #tpu.memory_space<vmem>>, vector<8x128xf32>,
    %c0_14 = arith.constant 0 : index
    %c0_15 = arith.constant 0 : index
    %16 = vector.load %arg6[%c0_14, %c0_15] : memref<128x128xf32, #tpu.memory_space<vmem>>, vector<128x128xf32>
    %c0_16 = arith.constant 0 : index
    %c0_17 = arith.constant 0 : index
    %17 = vector.load %arg7[%c0_16, %c0_17] : memref<1x128xf32, #tpu.memory_space<vmem>>, vector<1x128xf32>
    %cst_18 = arith.constant dense<0.000000e+00> : vector<8x128xf32>
    %18 = tpu.matmul %14, %16, %cst_18 {dimension_numbers = #tpu.dot_dimension_numbers<[1], [0], [0], [1], [0, 0, 1, 1], [], []>} : vector<8x128xf32>, vector<128x128xf32>, vector<8x128xf32> -> vector<8x128xf32>
    %19 = vector.broadcast %17 : vector<1x128xf32> to vector<8x128xf32>
    %20 = arith.addf %18, %19 : vector<8x128xf32>
    %c0_19 = arith.constant 0 : index
    %c0_20 = arith.constant 0 : index
    %21 = vector.load %arg8[%c0_19, %c0_20] : memref<8x128xf32, #tpu.memory_space<vmem>>, vector<8x128xf32>
    tpu.vector_store %arg8[%c0_19, %c0_20], %20 {strides = array<i32>} : memref<8x128xf32, #tpu.memory_space<vmem>>, vector<8x128xf32>,
    return
  }
  func.func @transform_0(%arg0: i32) -> (i32, i32) {
    %c0_i32 = arith.constant 0 : i32
    %c0_i32_0 = arith.constant 0 : i32
    return %arg0, %c0_i32 : i32, i32
  }
  func.func @transform_1(%arg0: i32) -> (i32, i32) {
    %c0_i32 = arith.constant 0 : i32
    %c0_i32_0 = arith.constant 0 : i32
    %c0_i32_1 = arith.constant 0 : i32
    return %c0_i32, %c0_i32_0 : i32, i32
  }
  func.func @transform_2(%arg0: i32) -> (i32, i32) {
    %c0_i32 = arith.constant 0 : i32
    %c0_i32_0 = arith.constant 0 : i32
    %c0_i32_1 = arith.constant 0 : i32
    return %c0_i32, %c0_i32_0 : i32, i32
  }
  func.func @transform_3(%arg0: i32) -> (i32, i32) {
    %c0_i32 = arith.constant 0 : i32
    %c0_i32_0 = arith.constant 0 : i32
    %c0_i32_1 = arith.constant 0 : i32
    return %c0_i32, %c0_i32_0 : i32, i32
  }
  func.func @transform_4(%arg0: i32) -> (i32, i32) {
    %c0_i32 = arith.constant 0 : i32
    %c0_i32_0 = arith.constant 0 : i32
    %c0_i32_1 = arith.constant 0 : i32
    return %c0_i32, %c0_i32_0 : i32, i32
  }
  func.func @transform_5(%arg0: i32) -> (i32, i32) {
    %c0_i32 = arith.constant 0 : i32
    %c0_i32_0 = arith.constant 0 : i32
    %c0_i32_1 = arith.constant 0 : i32
    return %c0_i32, %c0_i32_0 : i32, i32
  }
  func.func @transform_6(%arg0: i32) -> (i32, i32) {
    %c0_i32 = arith.constant 0 : i32
    %c0_i32_0 = arith.constant 0 : i32
    %c0_i32_1 = arith.constant 0 : i32
    return %c0_i32, %c0_i32_0 : i32, i32
  }
  func.func @transform_7(%arg0: i32) -> (i32, i32) {
    %c0_i32 = arith.constant 0 : i32
    %c0_i32_0 = arith.constant 0 : i32
    return %arg0, %c0_i32 : i32, i32
  }
  func.func @transform_8(%arg0: i32) -> (i32, i32) {
    %c0_i32 = arith.constant 0 : i32
    %c0_i32_0 = arith.constant 0 : i32
    return %arg0, %c0_i32 : i32, i32
  }
}

</mosaic_0001>

<bundles_post_ra>
// kernel: tpu_custom_call.1
= control target key start
LH: loop header
LB: loop body
LE: loop exit
PB: predicated region body
PF: predicated region fallthrough
CT: control target
= control target key end

     0   :  { %14 = vsyncpa [#allocation3], 0  ;;  %s1776_s0 = inlined_call_operand.hbm [shape: f32[16,128], index: 0, kind: input, shape index: {}]   ;;  %s1777_s1 = inlined_call_operand.hbm [shape: f32[128,128], index: 1, kind: input, shape index: {}]   ;;  %s1778_s2 = inlined_call_operand.vmem [shape: f32[1,128], index: 2, kind: input, shape index: {}]   ;;  %s1779_s3 = inlined_call_operand.hbm [shape: f32[128,128], index: 3, kind: input, shape index: {}]   ;;  %s1780_s4 = inlined_call_operand.vmem [shape: f32[1,128], index: 4, kind: input, shape index: {}]   ;;  %s1781_s5 = inlined_call_operand.hbm [shape: f32[128,128], index: 5, kind: input, shape index: {}]   ;;  %s1782_s6 = inlined_call_operand.vmem [shape: f32[1,128], index: 6, kind: input, shape index: {}]   ;;  %s1783_s7 = inlined_call_operand.hbm [shape: f32[16,128], index: 7, kind: output, shape index: {0}]   ;;  %s1784_s8 = inlined_call_operand.hbm [shape: f32[16,128], index: 8, kind: output, shape index: {1}]  }
   0x1   :  { %16 = vsyncpa [#allocation3 + $0x1], 0 }
   0x2   :  { %17 = vsyncpa [#allocation6], 0 }
   0x3   :  { %18 = vsyncpa [#allocation9], 0 }
   0x4   :  { %19 = vsyncpa [#allocation4], 0 }
   0x5   :  { %21 = vsyncpa [#allocation4 + $0x1], 0 }
   0x6   :  { %22 = vsyncpa [#allocation12], 0 }
   0x7   :  { %24 = vsyncpa [#allocation12 + $0x1], 0  ;;  %s1440_s27 = smov 0   ;;  %s1442_s28 = smov 0  }
   0x8   :  { %s1444_s29 = smov 0   ;;  %s1446_s30 = smov 0  }
   0x9 LB: > { %1790 = sst [smem:[#allocation18_spill]] %s1370_s27  ;;  %s1461_s9 = sadd.s32 4294967295, %s1382_s30   ;;  %s1382_s30 = sphi %s1446_s30, %s1813_s30   ;;  %s1378_s29 = sphi %s1444_s29, %s1812_s29   ;;  %s1374_s28 = sphi %s1442_s28, %s1811_s28   ;;  %s1370_s27 = sphi %s1440_s27, %s1810_s27  }
   0xa   : > { %s823_s10 = sadd.s32 4294967294, %s1382_s30   ;;  %p50_p0 = scmp.ne.s32.totalorder %s1374_s28, %s1370_s27 }
   0xb   : > { %p1785_p1 = scmp.eq.s32.totalorder %s1461_s9, 0  ;;  %p206_p3 = scmp.eq.s32.totalorder %s823_s10, 1 }
   0xc   : > { %p824_p5 = scmp.ge.s32.totalorder %s1382_s30, 1  ;;  %p239_p7 = scmp.lt.s32.totalorder %s1382_s30, 3 }
   0xd   : > { %p1470_p4 = por %p1785_p1, %p50_p0  ;;  %p1475_p6 = por %p206_p3, %p50_p0 }
   0xe   : > { %p1480_p8 = pnand %p824_p5, %p239_p7  ;;  %s1384_s14 = smov [#allocation5]  }
   0xf   : > { %s1791_s11 = scalar_select %p1470_p4, 1, 0 }
  0x10   : > { %s1792_s12 = scalar_select %p1475_p6, 1, 0 }
  0x11   : > { %s1794_s13 = scalar_select %p1480_p8, 1, 0 }
  0x12   : > { %1793 = sst [smem:[#allocation19_spill]] %s1792_s12  ;;  %s251_s15 = sshll.u32 %s1384_s14, 4  ;;  %s1484_s15 = int_to_ptr.vmem [resolvable:$true] %s251_s15 }
  0x13   : > { %p1093_p9 = pneg %p1480_p8  ;;  %s1385_s17 = smov [#allocation7]  }
  0x14   : > { %s267_s18 = sshll.u32 %s1385_s17, 4  ;;  %s1386_s19 = smov [#allocation8]   ;;  %s1495_s18 = int_to_ptr.vmem [resolvable:$true] %s267_s18 }
  0x15   : > { %p1491_p11 = pnand %p1093_p9, %p1785_p1  ;;  %s1497_s20 = sshll.u32 %s1386_s19, 4  ;;  %s284_s20 = int_to_ptr.vmem [resolvable:$true] %s1497_s20 }
  0x16   : > { %s1162_s23 = scalar_lea.hbm %s1777_s1, 2048 }
  0x17   : > { %p1163_p12 = scmp.ne.s32.totalorder %s1777_s1, %s1162_s23  ;;  %p1507_p13 = pneg %p1491_p11 }
  0x18   : > { %p1169_p5 = scmp.lt.u32.totalorder %s1162_s23, %s1777_s1 }
  0x19   : > { %p1165_p0 = pnand %p1507_p13, %p1163_p12 }
  0x1b   : > { %p1166_p3 = pneg %p1165_p0 }
  0x1d   : > { %p1171_p7 = pnand %p1169_p5, %p1166_p3 }
  0x1f   : > { %1174 = shalt.err (!%p1171_p7)
}
  0x20   : > { %s1175_s17 = scalar_lea.vmem %s1484_s15, 2048  ;;  %p1183_p2 = scmp.lt.s32.totalorder %s1484_s15, %s1484_s15 }
  0x21   : > { %p1176_p9 = scmp.ne.s32.totalorder %s1484_s15, %s1175_s17  ;;  %p1184_p6 = scmp.lt.s32.totalorder %s1175_s17, %s1175_s17 }
  0x23   : > { %p1178_p10 = pnand %p1176_p9, %p1507_p13  ;;  %p1185_p12 = por %p1184_p6, %p1183_p2 }
  0x25   : > { %p1179_p1 = pneg %p1178_p10 }
  0x27   : > { %p1186_p0 = pnand %p1185_p12, %p1179_p1 }
  0x29   : > { %1189 = shalt.err (!%p1186_p0)
}
  0x2a   : > { %s1387_s19 = smov 128   ;;  %s1388_s21 = smov 8  }
  0x2b   : > { %1096 = dma.hbm_to_vmem [thread:$0]  (!%p1491_p11), %s1777_s1, 2048, %s1484_s15, [#allocation6], %s1387_s19, %s1387_s19, %s1388_s21  }
  0x2c   : > { %s1190_s10 = scalar_lea.hbm %s1779_s3, 2048 }
  0x2d   : > { %p1191_p1 = scmp.ne.s32.totalorder %s1779_s3, %s1190_s10  ;;  %p1197_p10 = scmp.lt.u32.totalorder %s1190_s10, %s1779_s3 }
  0x2f   : > { %p1193_p2 = pnand %p1191_p1, %p1507_p13 }
  0x31   : > { %p1194_p6 = pneg %p1193_p2 }
  0x33   : > { %p1199_p3 = pnand %p1197_p10, %p1194_p6 }
  0x35   : > { %1202 = shalt.err (!%p1199_p3)
}
  0x36   : > { %s1203_s15 = scalar_lea.vmem %s1495_s18, 2048  ;;  %p1211_p12 = scmp.lt.s32.totalorder %s1495_s18, %s1495_s18 }
  0x37   : > { %p1204_p5 = scmp.ne.s32.totalorder %s1495_s18, %s1203_s15  ;;  %p1212_p0 = scmp.lt.s32.totalorder %s1203_s15, %s1203_s15 }
  0x39   : > { %p1206_p7 = pnand %p1204_p5, %p1507_p13  ;;  %p1213_p1 = por %p1212_p0, %p1211_p12 }
  0x3b   : > { %p1207_p9 = pneg %p1206_p7 }
  0x3d   : > { %p1214_p2 = pnand %p1213_p1, %p1207_p9 }
  0x3f   : > { %1217 = shalt.err (!%p1214_p2)
}
  0x40   : > { %1099 = dma.hbm_to_vmem [thread:$0]  (!%p1491_p11), %s1779_s3, 2048, %s1495_s18, [#allocation6], %s1387_s19, %s1387_s19, %s1388_s21  }
  0x41   : > { %s1218_s24 = scalar_lea.hbm %s1781_s5, 2048 }
  0x42   : > { %p1219_p6 = scmp.ne.s32.totalorder %s1781_s5, %s1218_s24  ;;  %p1225_p5 = scmp.lt.u32.totalorder %s1218_s24, %s1781_s5 }
  0x44   : > { %p1221_p10 = pnand %p1219_p6, %p1507_p13 }
  0x46   : > { %p1222_p3 = pneg %p1221_p10 }
  0x48   : > { %p1227_p7 = pnand %p1225_p5, %p1222_p3 }
  0x4a   : > { %1230 = shalt.err (!%p1227_p7)
}
  0x4b   : > { %s1231_s15 = scalar_lea.vmem %s284_s20, 2048  ;;  %p1239_p1 = scmp.lt.s32.totalorder %s284_s20, %s284_s20 }
  0x4c   : > { %p1232_p9 = scmp.ne.s32.totalorder %s284_s20, %s1231_s15  ;;  %p1240_p2 = scmp.lt.s32.totalorder %s1231_s15, %s1231_s15 }
  0x4e   : > { %p1234_p12 = pnand %p1232_p9, %p1507_p13  ;;  %p1241_p4 = por %p1240_p2, %p1239_p1 }
  0x50   : > { %p1235_p0 = pneg %p1234_p12 }
  0x52   : > { %p1242_p8 = pnand %p1241_p4, %p1235_p0 }
  0x54   : > { %1245 = shalt.err (!%p1242_p8)
}
  0x55   : > { %1102 = dma.hbm_to_vmem [thread:$0]  (!%p1491_p11), %s1781_s5, 2048, %s284_s20, [#allocation9], %s1387_s19, %s1387_s19, %s1388_s21  }
  0x56   : > { %s1580_s26 = sadd.s32 1, %s1382_s30   ;;  %s37_s12 = sadd.s32 1, %s1378_s29 }
  0x57   : > { %s34_s16 = ssub.s32 %s1382_s30, %s1580_s26  ;;  %p44_p8 = scmp.ne.s32.totalorder %s1378_s29, %s1374_s28 }
  0x58   : > { %p35_p4 = scmp.eq.s32.totalorder %s34_s16, 0  ;;  %p45_p13 = scmp.eq.s32.totalorder %s1382_s30, 0 }
  0x59   : > { %p1117_p6 = scmp.lt.s32.totalorder %s1382_s30, 2  ;;  %p1797_p3 = scmp.eq.s32.totalorder %s1461_s9, 1 }
  0x5a   : > { %s1590_s22 = scalar_select %p35_p4, %s1378_s29, %s37_s12  }
  0x5b   : > { %p46_p10 = por %p45_p13, %p44_p8  ;;  %p1594_p5 = por %p1797_p3, %p44_p8 }
  0x5c   : > { %s300_s24 = sand.u32 1, %s1378_s29   ;;  %s830_s25 = sshll.u32 %s1382_s30, 7 }
  0x5d   : > { %s829_s20 = sshll.u32 %s300_s24, 3  ;;  %s1603_s10 = scalar_lea.hbm %s1776_s0, %s830_s25 }
  0x5e   : > { %s304_s14 = scalar_lea.vmem [#allocation2], %s829_s20  ;;  %p1605_p11 = pnand %p1117_p6, %p46_p10 }
  0x5f   : > { %s311_s17 = sshll.u32 %s304_s14, 4  ;;  %s301_s18 = scalar_lea.sflag [#allocation3], %s300_s24  ;;  %s1609_s17 = int_to_ptr.vmem [resolvable:$true] %s311_s17 }
  0x60   : > { %s1246_s27 = scalar_lea.hbm %s1603_s10, 128  ;;  %p1248_p9 = pneg %p1605_p11 }
  0x61   : > { %p1247_p7 = scmp.ne.s32.totalorder %s1603_s10, %s1246_s27  ;;  %s1251_s25 = scalar_lea.hbm %s1776_s0, 256 }
  0x62   : > { %p1252_p1 = scmp.lt.u32.totalorder %s1603_s10, %s1776_s0  ;;  %p1253_p2 = scmp.lt.u32.totalorder %s1251_s25, %s1246_s27 }
  0x63   : > { %p1249_p12 = pnand %p1248_p9, %p1247_p7  ;;  %p1255_p8 = scmp.lt.u32.totalorder %s1246_s27, %s1603_s10 }
  0x64   : > { %p1254_p4 = por %p1253_p2, %p1252_p1 }
  0x65   : > { %p1250_p0 = pneg %p1249_p12 }
  0x66   : > { %p1256_p13 = por %p1255_p8, %p1254_p4 }
  0x68   : > { %p1257_p6 = pnand %p1256_p13, %p1250_p0 }
  0x6a   : > { %1260 = shalt.err (!%p1257_p6)
}
  0x6b   : > { %s1261_s24 = scalar_lea.vmem %s1609_s17, 128  ;;  %s1389_s21 = smov [#allocation2]  }
  0x6c   : > { %p1262_p10 = scmp.ne.s32.totalorder %s1609_s17, %s1261_s24  ;;  %s1266_s14 = sshll.u32 %s1389_s21, 4  ;;  %s1267_s14 = int_to_ptr.vmem [resolvable:$false] %s1266_s14 }
  0x6d   : > { %s1268_s16 = scalar_lea.vmem %s1267_s14, 256  ;;  %p1269_p12 = scmp.lt.s32.totalorder %s1609_s17, %s1267_s14 }
  0x6e   : > { %p1264_p3 = pnand %p1262_p10, %p1248_p9  ;;  %p1270_p1 = scmp.lt.s32.totalorder %s1268_s16, %s1261_s24 }
  0x70   : > { %p1265_p7 = pneg %p1264_p3  ;;  %p1271_p2 = por %p1270_p1, %p1269_p12 }
  0x72   : > { %p1272_p4 = pnand %p1271_p2, %p1265_p7 }
  0x74   : > { %1275 = shalt.err (!%p1272_p4)
}
  0x75   : > { %1106 = dma.hbm_to_vmem [thread:$0]  (!%p1605_p11), %s1603_s10, 128, %s1609_s17, %s301_s18  }
  0x76   : > { %p1800_p0 = scmp.ne.s32.totalorder %s1794_s13, 0 }
  0x77   : > { %s1639_s27 = sand.u32 (!%p1800_p0), 1, %s1374_s28   ;;  %p1801_p9 = scmp.ne.s32.totalorder (!%p1800_p0), %s1791_s11, 0 }
  0x78   : > { %320 = sbr.rel (%p1800_p0) target bundleno = 830 (0x33e), region = 48  ;;  %s1642_s12 = sshll.u32 (!%p1800_p0), %s1639_s27, 3 }
  0x79   : > { %s323_s25 = scalar_lea.sflag (!%p1800_p0), [#allocation3], %s1639_s27  ;;  %s326_s20 = scalar_lea.vmem (!%p1800_p0), [#allocation2], %s1642_s12 }
  0x7f   : > { %1349 = dma.done.wait (%p1801_p9), %s323_s25, 128  }
  0x80   : > { %1351 = vsyncadd (%p1801_p9), %s323_s25, 4294967168  ;;  %p1802_p11 = scmp.eq.s32.totalorder %s1461_s9, 0 }
  0x82   : > { %1353 = dma.done.wait (%p1802_p11), [#allocation6], 4096   ;;  %p1803_p8 = pmov %p1802_p11 }
  0x84   : > { %1355 = vsyncadd (%p1803_p8), [#allocation6], 4294963200  ;;  %p1804_p13 = pmov %p1803_p8 }
  0x85   : > { %p1805_p6 = pmov %p1803_p8 }
  0x86   : > { %1357 = dma.done.wait (%p1804_p13), [#allocation9], 2048  }
  0x87   : > { %1359 = vsyncadd (%p1805_p6), [#allocation9], 4294965248  ;;  %v1390_v0 = vmov 0.0|0.0   ;;  %vm1391_vm0 = vmmov 0   ;;  %v1392_v1 = vmov 0.0   ;;  %v377_v2 = vld [vmem:[#allocation5] sm:$0xff] }
  0x88   : > { %1003 = vmatprep.subr.bf16.mxu0 %v1390_v0  ;;  %930 = vmatprep.mubr.msk.f32.mxu0 %vm1391_vm0, %v1392_v1  ;;  %v378_v3 = vld [vmem:[#allocation5 + $0x8] sm:$0xff]  ;;  %v379_v4 = vld [vmem:[#allocation5 + $0x10] sm:$0xff]  ;;  %v380_v6 = vld [vmem:[#allocation5 + $0x18] sm:$0xff]  ;;  %s375_s15 = scalar_lea.vmem [#allocation11], %s1642_s12  ;;  %s843_s18 = sshll.u32 %s1461_s9, 7 }
  0x89   : > { %1027 = vmatprep.subr.bf16.mxu1 %v1390_v0  ;;  %965 = vmatprep.mubr.msk.f32.mxu1 %vm1391_vm0, %v1392_v1  ;;  %v1004_v5 = vpack.c.bf16 %v378_v3, %v377_v2  ;;  %v1007_v7 = vpack.c.bf16 %v380_v6, %v379_v4  ;;  %v381_v8 = vld [vmem:[#allocation5 + $0x20] sm:$0xff]  ;;  %v382_v9 = vld [vmem:[#allocation5 + $0x28] sm:$0xff]  ;;  %v473_v12 = vld [vmem:[#allocation7 + $0x10] sm:$0xff]  ;;  %s1703_s21 = scalar_lea.hbm %s1784_s8, %s843_s18  ;;  %s692_s14 = sshll.u32 %s375_s15, 4  ;;  %s693_s14 = int_to_ptr.vmem [resolvable:$true] %s692_s14 }
  0x8a   : > { %v471_v10 = vld [vmem:[#allocation7] sm:$0xff]  ;;  %v472_v11 = vld [vmem:[#allocation7 + $0x8] sm:$0xff]  ;;  %v474_v13 = vld [vmem:[#allocation7 + $0x18] sm:$0xff]  ;;  %v1010_v14 = vpack.c.bf16 %v382_v9, %v381_v8  ;;  %s666_s16 = scalar_lea.sflag [#allocation12], %s1639_s27  ;;  %s1276_s25 = scalar_lea.vmem %s693_s14, 128 }
  0x8b   : > { %1005 = vmatpush3.bf16.msra.mxu0 %v1004_v5  ;;  %v1028_v15 = vpack.c.bf16 %v472_v11, %v471_v10  ;;  %v383_v16 = vld [vmem:[#allocation5 + $0x30] sm:$0xff]  ;;  %v384_v17 = vld [vmem:[#allocation5 + $0x38] sm:$0xff]  ;;  %v1031_v18 = vpack.c.bf16 %v474_v13, %v473_v12  ;;  %v475_v19 = vld [vmem:[#allocation7 + $0x20] sm:$0xff]  ;;  %p1277_p10 = scmp.ne.s32.totalorder %s693_s14, %s1276_s25 }
  0x8c   : > { %1006 = vmatprep.subr.bf16.mxu0 %v1390_v0  ;;  %v476_v20 = vld [vmem:[#allocation7 + $0x28] sm:$0xff]  ;;  %v1013_v21 = vpack.c.bf16 %v384_v17, %v383_v16  ;;  %v385_v22 = vld [vmem:[#allocation5 + $0x40] sm:$0xff]  ;;  %v477_v25 = vld [vmem:[#allocation7 + $0x30] sm:$0xff] }
  0x8d   : > { %1029 = vmatpush3.bf16.msra.mxu1 %v1028_v15  ;;  %v386_v23 = vld [vmem:[#allocation5 + $0x48] sm:$0xff]  ;;  %v1034_v24 = vpack.c.bf16 %v476_v20, %v475_v19  ;;  %v478_v26 = vld [vmem:[#allocation7 + $0x38] sm:$0xff]  ;;  %v387_v28 = vld [vmem:[#allocation5 + $0x50] sm:$0xff]  ;;  %p1278_p3 = pnand %p1277_p10, %p1594_p5 }
  0x8e   : > { %1030 = vmatprep.subr.bf16.mxu1 %v1390_v0  ;;  %v1016_v27 = vpack.c.bf16 %v386_v23, %v385_v22  ;;  %v388_v29 = vld [vmem:[#allocation5 + $0x58] sm:$0xff]  ;;  %v1037_v30 = vpack.c.bf16 %v478_v26, %v477_v25  ;;  %v479_v31 = vld [vmem:[#allocation7 + $0x40] sm:$0xff]  ;;  %v480_v32 = vld [vmem:[#allocation7 + $0x48] sm:$0xff] }
  0x8f   : > { %1008 = vmatpush3.bf16.msra.mxu0 %v1007_v7  ;;  %v1019_v33 = vpack.c.bf16 %v388_v29, %v387_v28  ;;  %v389_v34 = vld [vmem:[#allocation5 + $0x60] sm:$0xff]  ;;  %v390_v35 = vld [vmem:[#allocation5 + $0x68] sm:$0xff]  ;;  %v1040_v36 = vpack.c.bf16 %v480_v32, %v479_v31  ;;  %v481_v37 = vld [vmem:[#allocation7 + $0x50] sm:$0xff]  ;;  %p1279_p7 = pneg %p1278_p3 }
  0x90   : > { %1009 = vmatprep.subr.bf16.mxu0 %v1390_v0  ;;  %v482_v38 = vld [vmem:[#allocation7 + $0x58] sm:$0xff]  ;;  %v1022_v39 = vpack.c.bf16 %v390_v35, %v389_v34  ;;  %v391_v40 = vld [vmem:[#allocation5 + $0x70] sm:$0xff]  ;;  %v483_v43 = vld [vmem:[#allocation7 + $0x60] sm:$0xff] }
  0x91   : > { %1032 = vmatpush3.bf16.msra.mxu1 %v1031_v18  ;;  %v392_v41 = vld [vmem:[#allocation5 + $0x78] sm:$0xff]  ;;  %v1043_v42 = vpack.c.bf16 %v482_v38, %v481_v37  ;;  %v484_v44 = vld [vmem:[#allocation7 + $0x68] sm:$0xff]  ;;  %v485_v48 = vld [vmem:[#allocation7 + $0x70] sm:$0xff] }
  0x92   : > { %1033 = vmatprep.subr.bf16.mxu1 %v1390_v0  ;;  %v1025_v45 = vpack.c.bf16 %v392_v41, %v391_v40  ;;  %v1046_v46 = vpack.c.bf16 %v484_v44, %v483_v43  ;;  %v376_v47 = vld [vmem:[%s326_s20] sm:$0xff]  ;;  %v566_v51 = vld [vmem:[#allocation8] sm:$0xff]  ;;  %v567_v52 = vld [vmem:[#allocation8 + $0x8] sm:$0xff]  ;;  %s1393_s20 = smov [#allocation11]  }
  0x93   : > { %1011 = vmatpush3.bf16.msra.mxu0 %v1010_v14  ;;  %v486_v49 = vld [vmem:[#allocation7 + $0x78] sm:$0xff]  ;;  %v568_v53 = vld [vmem:[#allocation8 + $0x10] sm:$0xff]  ;;  %v1052_v54 = vpack.c.bf16 %v567_v52, %v566_v51  ;;  %v570_v57 = vld [vmem:[#allocation8 + $0x20] sm:$0xff]  ;;  %s1280_s11 = sshll.u32 %s1393_s20, 4  ;;  %s1281_s11 = int_to_ptr.vmem [resolvable:$false] %s1280_s11 }
  0x94   : > { %1012 = vmatprep.subr.bf16.mxu0 %v1390_v0  ;;  %v1049_v50 = vpack.c.bf16 %v486_v49, %v485_v48  ;;  %v569_v55 = vld [vmem:[#allocation8 + $0x18] sm:$0xff]  ;;  %v571_v58 = vld [vmem:[#allocation8 + $0x28] sm:$0xff]  ;;  %v572_v60 = vld [vmem:[#allocation8 + $0x30] sm:$0xff]  ;;  %s1282_s13 = scalar_lea.vmem %s1281_s11, 256  ;;  %p1283_p12 = scmp.lt.s32.totalorder %s693_s14, %s1281_s11 }
  0x95   : > { %1035 = vmatpush3.bf16.msra.mxu1 %v1034_v24  ;;  %v1055_v56 = vpack.c.bf16 %v569_v55, %v568_v53  ;;  %v1058_v59 = vpack.c.bf16 %v571_v58, %v570_v57  ;;  %v573_v61 = vld [vmem:[#allocation8 + $0x38] sm:$0xff]  ;;  %v574_v63 = vld [vmem:[#allocation8 + $0x40] sm:$0xff]  ;;  %v576_v3 = vld [vmem:[#allocation8 + $0x50] sm:$0xff]  ;;  %p1284_p1 = scmp.lt.s32.totalorder %s1282_s13, %s1276_s25 }
  0x96   : > { %1036 = vmatprep.subr.bf16.mxu1 %v1390_v0  ;;  %v1061_v62 = vpack.c.bf16 %v573_v61, %v572_v60  ;;  %v577_v4 = vld [vmem:[#allocation8 + $0x58] sm:$0xff]  ;;  %v578_v6 = vld [vmem:[#allocation8 + $0x60] sm:$0xff]  ;;  %v579_v7 = vld [vmem:[#allocation8 + $0x68] sm:$0xff] }
  0x97   : > { %1014 = vmatpush3.bf16.msra.mxu0 %v1013_v21  ;;  %v1067_v5 = vpack.c.bf16 %v577_v4, %v576_v3  ;;  %v1070_v8 = vpack.c.bf16 %v579_v7, %v578_v6  ;;  %v838_v9 = vld [vmem:[%s1778_s2] ss:$0 sm:$0xff]  ;;  %v581_v15 = vld [vmem:[#allocation8 + $0x78] sm:$0xff]  ;;  %p1285_p2 = por %p1284_p1, %p1283_p12 }
  0x98   : > { %1015 = vmatprep.subr.bf16.mxu0 %v1390_v0  ;;  %v580_v14 = vld [vmem:[#allocation8 + $0x70] sm:$0xff] }
  0x99   : > { %1038 = vmatpush3.bf16.msra.mxu1 %v1037_v30  ;;  %v1073_v16 = vpack.c.bf16 %v581_v15, %v580_v14  ;;  %p1286_p4 = pnand %p1285_p2, %p1279_p7 }
  0x9a   : > { %1039 = vmatprep.subr.bf16.mxu1 %v1390_v0 }
  0x9b   : > { %1017 = vmatpush3.bf16.msra.mxu0 %v1016_v27 }
  0x9c   : > { %1018 = vmatprep.subr.bf16.mxu0 %v1390_v0 }
  0x9d   : > { %1041 = vmatpush3.bf16.msra.mxu1 %v1040_v36 }
  0x9e   : > { %1042 = vmatprep.subr.bf16.mxu1 %v1390_v0 }
  0x9f   : > { %1020 = vmatpush3.bf16.msra.mxu0 %v1019_v33 }
  0xa0   : > { %1021 = vmatprep.subr.bf16.mxu0 %v1390_v0 }
  0xa1   : > { %1044 = vmatpush3.bf16.msra.mxu1 %v1043_v42 }
  0xa2   : > { %1045 = vmatprep.subr.bf16.mxu1 %v1390_v0 }
  0xa3   : > { %1023 = vmatpush3.bf16.msra.mxu0 %v1022_v39 }
  0xa4   : > { %1024 = vmatprep.subr.bf16.mxu0 %v1390_v0 }
  0xa5   : > { %1047 = vmatpush3.bf16.msra.mxu1 %v1046_v46 }
  0xa6   : > { %1048 = vmatprep.subr.bf16.mxu1 %v1390_v0 }
  0xa7   : > { %1026 = vmatpush3.bf16.msra.mxu0 %v1025_v45 }
  0xa8   : > { %1051 = vmatprep.subr.bf16.mxu0 %v1390_v0 }
  0xa9   : > { %1050 = vmatpush3.bf16.msra.mxu1 %v1049_v50 }
  0xaa   : > { %931 = vmatmul.mubr.f32.vlgmr.msra.gmra.mrb[0].mxu0 %v376_v47 }
  0xab   : > { %1000 = vmatprep.mubr.msk.f32.mxu0 %vm1391_vm0, %v1392_v1  ;;  %1053 = vmatpush3.bf16.msra.mxu0 %v1052_v54  ;;  %v575_v1 = vld [vmem:[#allocation8 + $0x48] sm:$0xff] }
  0xac   : > { %1054 = vmatprep.subr.bf16.mxu0 %v1390_v0  ;;  %v1064_v2 = vpack.c.bf16 %v575_v1, %v574_v63 }
  0xaf   : > { %1056 = vmatpush3.bf16.msra.mxu0 %v1055_v56 }
  0xb0   : > { %1057 = vmatprep.subr.bf16.mxu0 %v1390_v0 }
  0xb3   : > { %1059 = vmatpush3.bf16.msra.mxu0 %v1058_v59 }
  0xb4   : > { %1060 = vmatprep.subr.bf16.mxu0 %v1390_v0 }
  0xb7   : > { %1062 = vmatpush3.bf16.msra.mxu0 %v1061_v62 }
  0xb8   : > { %1063 = vmatprep.subr.bf16.mxu0 %v1390_v0 }
  0xbb   : > { %1065 = vmatpush3.bf16.msra.mxu0 %v1064_v2 }
  0xbc   : > { %1066 = vmatprep.subr.bf16.mxu0 %v1390_v0 }
  0xbf   : > { %1068 = vmatpush3.bf16.msra.mxu0 %v1067_v5 }
  0xc0   : > { %1069 = vmatprep.subr.bf16.mxu0 %v1390_v0 }
  0xc3   : > { %1071 = vmatpush3.bf16.msra.mxu0 %v1070_v8 }
  0xc4   : > { %1072 = vmatprep.subr.bf16.mxu0 %v1390_v0  ;;  %v839_v0 = vld [vmem:[%s1780_s4] ss:$0 sm:$0xff] }
  0xc7   : > { %1074 = vmatpush3.bf16.msra.mxu0 %v1073_v16 }
 0x17d   : > { %v466_v10 = vpop.f32.mrb[0].mxu0 }
 0x17e   : > { %v467_v11 = vadd.f32 %v838_v9, %v466_v10  ;;  %v932_v12 = vpop.f32.mrb[1].mxu0 }
 0x180   : > { %v470_v13 = vmax.f32 %v467_v11, 0.0 }
 0x182   : > { %966 = vmatmul.mubr.f32.vlgmr.msra.gmra.mrb[0].mxu1 %v470_v13 }
 0x255   : > { %v560_v17 = vpop.f32.mrb[0].mxu1 }
 0x256   : > { %v561_v18 = vadd.f32 %v839_v0, %v560_v17  ;;  %v967_v19 = vpop.f32.mrb[1].mxu1 }
 0x258   : > { %v564_v20 = vmax.f32 %v561_v18, 0.0 }
 0x25a   : > { %565 = vst [vmem:[%s375_s15] sm:$0xff] %v564_v20  ;;  %1001 = vmatmul.mubr.f32.vlgmr.msra.gmra.mrb[2].mxu0 %v564_v20 }
 0x25b   : > { %1289 = shalt.err (!%p1286_p4)
}
 0x25c   : > { %s1290_s10 = scalar_lea.hbm %s1703_s21, 128  ;;  %s1294_s19 = scalar_lea.hbm %s1784_s8, 256 }
 0x25d   : > { %p1291_p0 = scmp.ne.s32.totalorder %s1703_s21, %s1290_s10  ;;  %p1295_p8 = scmp.lt.u32.totalorder %s1703_s21, %s1784_s8 }
 0x25e   : > { %p1296_p13 = scmp.lt.u32.totalorder %s1294_s19, %s1290_s10  ;;  %p1298_p10 = scmp.lt.u32.totalorder %s1290_s10, %s1703_s21 }
 0x25f   : > { %p1292_p9 = pnand %p1291_p0, %p1594_p5 }
 0x260   : > { %p1297_p6 = por %p1296_p13, %p1295_p8 }
 0x261   : > { %p1293_p11 = pneg %p1292_p9 }
 0x262   : > { %p1299_p3 = por %p1298_p10, %p1297_p6 }
 0x264   : > { %p1300_p7 = pnand %p1299_p3, %p1293_p11 }
 0x266   : > { %1303 = shalt.err (!%p1300_p7)
}
 0x267   : > { %1090 = dma.vmem_to_hbm [thread:$0]  (%p1594_p5), %s693_s14, 128, %s1703_s21, %s666_s16   ;;  %v840_v21 = vld [vmem:[%s1782_s6] ss:$0 sm:$0xff] }
 0x268   : > { %s368_s13 = scalar_lea.vmem [#allocation10], %s1642_s12  ;;  %s1732_s19 = scalar_lea.hbm %s1783_s7, %s843_s18 }
 0x269   : > { %s679_s17 = sshll.u32 %s368_s13, 4  ;;  %s661_s21 = scalar_lea.sflag [#allocation4], %s1639_s27  ;;  %s1734_s17 = int_to_ptr.vmem [resolvable:$true] %s679_s17 }
 0x26a   : > { %s1304_s14 = scalar_lea.vmem %s1734_s17, 128  ;;  %s1394_s12 = smov [#allocation10]  }
 0x26b   : > { %p1305_p12 = scmp.ne.s32.totalorder %s1734_s17, %s1304_s14  ;;  %s1308_s16 = sshll.u32 %s1394_s12, 4  ;;  %s1309_s16 = int_to_ptr.vmem [resolvable:$false] %s1308_s16 }
 0x26c   : > { %s1310_s9 = scalar_lea.vmem %s1309_s16, 256  ;;  %p1311_p4 = scmp.lt.s32.totalorder %s1734_s17, %s1309_s16 }
 0x26d   : > { %p1306_p1 = pnand %p1305_p12, %p1594_p5  ;;  %p1312_p0 = scmp.lt.s32.totalorder %s1310_s9, %s1304_s14 }
 0x26f   : > { %p1307_p2 = pneg %p1306_p1  ;;  %p1313_p9 = por %p1312_p0, %p1311_p4 }
 0x271   : > { %p1314_p11 = pnand %p1313_p9, %p1307_p2 }
 0x32d   : > { %v655_v22 = vpop.f32.mrb[2].mxu0 }
 0x32e   : > { %v656_v23 = vadd.f32 %v840_v21, %v655_v22  ;;  %v1002_v24 = vpop.f32.mrb[3].mxu0 }
 0x330   : > { %659 = vst [vmem:[%s368_s13] sm:$0xff] %v656_v23 }
 0x331   : > { %1317 = shalt.err (!%p1314_p11)
}
 0x332   : > { %s1318_s27 = scalar_lea.hbm %s1732_s19, 128  ;;  %s1322_s20 = scalar_lea.hbm %s1783_s7, 256 }
 0x333   : > { %p1319_p8 = scmp.ne.s32.totalorder %s1732_s19, %s1318_s27  ;;  %p1323_p10 = scmp.lt.u32.totalorder %s1732_s19, %s1783_s7 }
 0x334   : > { %p1324_p3 = scmp.lt.u32.totalorder %s1322_s20, %s1318_s27  ;;  %p1326_p12 = scmp.lt.u32.totalorder %s1318_s27, %s1732_s19 }
 0x335   : > { %p1320_p13 = pnand %p1319_p8, %p1594_p5 }
 0x336   : > { %p1325_p7 = por %p1324_p3, %p1323_p10 }
 0x337   : > { %p1321_p6 = pneg %p1320_p13 }
 0x338   : > { %p1327_p1 = por %p1326_p12, %p1325_p7 }
 0x33a   : > { %p1328_p2 = pnand %p1327_p1, %p1321_p6 }
 0x33c   : > { %1331 = shalt.err (!%p1328_p2)
}
 0x33d   : > { %1089 = dma.vmem_to_hbm [thread:$0]  (%p1594_p5), %s1734_s17, 128, %s1732_s19, %s661_s21  }
 0x33e PF: > { %s1806_s13 = sld [smem:[#allocation18_spill]]  ;;  %s1807_s10 = sld [smem:[#allocation19_spill]] }
 0x33f   : > { %p1809_p0 = scmp.ge.s32.totalorder %s1382_s30, 2 }
 0x344   : > { %s704_s15 = sand.u32 1, %s1806_s13   ;;  %p1808_p4 = scmp.ne.s32.totalorder %s1807_s10, 0 }
 0x345   : > { %s705_s14 = scalar_lea.sflag [#allocation4], %s704_s15 }
 0x346   : > { %p1108_p9 = pnand %p1809_p0, %p1808_p4 }
 0x348   : > { %1361 = dma.done.wait (!%p1108_p9), %s705_s14, 128  }
 0x349   : > { %1363 = vsyncadd (!%p1108_p9), %s705_s14, 4294967168  ;;  %s714_s12 = scalar_lea.sflag [#allocation12], %s704_s15 }
 0x34a   : > { %1365 = dma.done.wait (!%p1108_p9), %s714_s12, 128  }
 0x34b   : > { %1367 = vsyncadd (!%p1108_p9), %s714_s12, 4294967168  ;;  %p27_p5 = scmp.ge.s32.totalorder %s1580_s26, 4   ;;  %s1810_s27 = smov %s1374_s28 }
 0x34c   : > { %s1811_s28 = smov %s1378_s29  ;;  %s1812_s29 = smov %s1590_s22 }
 0x34d   : > { %s1813_s30 = smov %s1580_s26  ;;  %29 = sbr.rel (!%p27_p5) target bundleno = 9 (0x9), region = 122 }
 0x354   :  { %719 = vsyncpa [#allocation3], 1 }
 0x355   :  { %721 = vsyncpa [#allocation3 + $0x1], 1 }
 0x356   :  { %722 = vsyncpa [#allocation6], 1 }
 0x357   :  { %723 = vsyncpa [#allocation9], 1 }
 0x358   :  { %724 = vsyncpa [#allocation4], 1 }
 0x359   :  { %726 = vsyncpa [#allocation4 + $0x1], 1 }
 0x35a   :  { %727 = vsyncpa [#allocation12], 1 }
 0x35b   :  { %729 = vsyncpa [#allocation12 + $0x1], 1 }

// kernel: tpu_custom_call.1
= control target key start
LH: loop header
LB: loop body
LE: loop exit
PB: predicated region body
PF: predicated region fallthrough
CT: control target
= control target key end

     0   :  { %14 = vsyncpa [#allocation3], 0  ;;  %s1776_s0 = inlined_call_operand.hbm [shape: f32[16,128], index: 0, kind: input, shape index: {}]   ;;  %s1777_s1 = inlined_call_operand.hbm [shape: f32[128,128], index: 1, kind: input, shape index: {}]   ;;  %s1778_s2 = inlined_call_operand.vmem [shape: f32[1,128], index: 2, kind: input, shape index: {}]   ;;  %s1779_s3 = inlined_call_operand.hbm [shape: f32[128,128], index: 3, kind: input, shape index: {}]   ;;  %s1780_s4 = inlined_call_operand.vmem [shape: f32[1,128], index: 4, kind: input, shape index: {}]   ;;  %s1781_s5 = inlined_call_operand.hbm [shape: f32[128,128], index: 5, kind: input, shape index: {}]   ;;  %s1782_s6 = inlined_call_operand.vmem [shape: f32[1,128], index: 6, kind: input, shape index: {}]   ;;  %s1783_s7 = inlined_call_operand.hbm [shape: f32[16,128], index: 7, kind: output, shape index: {0}]   ;;  %s1784_s8 = inlined_call_operand.hbm [shape: f32[16,128], index: 8, kind: output, shape index: {1}]  }
   0x1   :  { %16 = vsyncpa [#allocation3 + $0x1], 0 }
   0x2   :  { %17 = vsyncpa [#allocation6], 0 }
   0x3   :  { %18 = vsyncpa [#allocation9], 0 }
   0x4   :  { %19 = vsyncpa [#allocation4], 0 }
   0x5   :  { %21 = vsyncpa [#allocation4 + $0x1], 0 }
   0x6   :  { %22 = vsyncpa [#allocation12], 0 }
   0x7   :  { %24 = vsyncpa [#allocation12 + $0x1], 0  ;;  %s1440_s27 = smov 0   ;;  %s1442_s28 = smov 0  }
   0x8   :  { %s1444_s29 = smov 0   ;;  %s1446_s30 = smov 0  }
   0x9 LB: > { %1790 = sst [smem:[#allocation18_spill]] %s1370_s27  ;;  %s1461_s9 = sadd.s32 4294967295, %s1382_s30   ;;  %s1382_s30 = sphi %s1446_s30, %s1813_s30   ;;  %s1378_s29 = sphi %s1444_s29, %s1812_s29   ;;  %s1374_s28 = sphi %s1442_s28, %s1811_s28   ;;  %s1370_s27 = sphi %s1440_s27, %s1810_s27  }
   0xa   : > { %s823_s10 = sadd.s32 4294967294, %s1382_s30   ;;  %p50_p0 = scmp.ne.s32.totalorder %s1374_s28, %s1370_s27 }
   0xb   : > { %p1785_p1 = scmp.eq.s32.totalorder %s1461_s9, 0  ;;  %p206_p3 = scmp.eq.s32.totalorder %s823_s10, 1 }
   0xc   : > { %p824_p5 = scmp.ge.s32.totalorder %s1382_s30, 1  ;;  %p239_p7 = scmp.lt.s32.totalorder %s1382_s30, 3 }
   0xd   : > { %p1470_p4 = por %p1785_p1, %p50_p0  ;;  %p1475_p6 = por %p206_p3, %p50_p0 }
   0xe   : > { %p1480_p8 = pnand %p824_p5, %p239_p7  ;;  %s1384_s14 = smov [#allocation5]  }
   0xf   : > { %s1791_s11 = scalar_select %p1470_p4, 1, 0 }
  0x10   : > { %s1792_s12 = scalar_select %p1475_p6, 1, 0 }
  0x11   : > { %s1794_s13 = scalar_select %p1480_p8, 1, 0 }
  0x12   : > { %1793 = sst [smem:[#allocation19_spill]] %s1792_s12  ;;  %s251_s15 = sshll.u32 %s1384_s14, 4  ;;  %s1484_s15 = int_to_ptr.vmem [resolvable:$true] %s251_s15 }
  0x13   : > { %p1093_p9 = pneg %p1480_p8  ;;  %s1385_s17 = smov [#allocation7]  }
  0x14   : > { %s267_s18 = sshll.u32 %s1385_s17, 4  ;;  %s1386_s19 = smov [#allocation8]   ;;  %s1495_s18 = int_to_ptr.vmem [resolvable:$true] %s267_s18 }
  0x15   : > { %p1491_p11 = pnand %p1093_p9, %p1785_p1  ;;  %s1497_s20 = sshll.u32 %s1386_s19, 4  ;;  %s284_s20 = int_to_ptr.vmem [resolvable:$true] %s1497_s20 }
  0x16   : > { %s1162_s23 = scalar_lea.hbm %s1777_s1, 2048 }
  0x17   : > { %p1163_p12 = scmp.ne.s32.totalorder %s1777_s1, %s1162_s23  ;;  %p1507_p13 = pneg %p1491_p11 }
  0x18   : > { %p1169_p5 = scmp.lt.u32.totalorder %s1162_s23, %s1777_s1 }
  0x19   : > { %p1165_p0 = pnand %p1507_p13, %p1163_p12 }
  0x1b   : > { %p1166_p3 = pneg %p1165_p0 }
  0x1d   : > { %p1171_p7 = pnand %p1169_p5, %p1166_p3 }
  0x1f   : > { %1174 = shalt.err (!%p1171_p7)
}
  0x20   : > { %s1175_s17 = scalar_lea.vmem %s1484_s15, 2048  ;;  %p1183_p2 = scmp.lt.s32.totalorder %s1484_s15, %s1484_s15 }
  0x21   : > { %p1176_p9 = scmp.ne.s32.totalorder %s1484_s15, %s1175_s17  ;;  %p1184_p6 = scmp.lt.s32.totalorder %s1175_s17, %s1175_s17 }
  0x23   : > { %p1178_p10 = pnand %p1176_p9, %p1507_p13  ;;  %p1185_p12 = por %p1184_p6, %p1183_p2 }
  0x25   : > { %p1179_p1 = pneg %p1178_p10 }
  0x27   : > { %p1186_p0 = pnand %p1185_p12, %p1179_p1 }
  0x29   : > { %1189 = shalt.err (!%p1186_p0)
}
  0x2a   : > { %s1387_s19 = smov 128   ;;  %s1388_s21 = smov 8  }
  0x2b   : > { %1096 = dma.hbm_to_vmem [thread:$0]  (!%p1491_p11), %s1777_s1, 2048, %s1484_s15, [#allocation6], %s1387_s19, %s1387_s19, %s1388_s21  }
  0x2c   : > { %s1190_s10 = scalar_lea.hbm %s1779_s3, 2048 }
  0x2d   : > { %p1191_p1 = scmp.ne.s32.totalorder %s1779_s3, %s1190_s10  ;;  %p1197_p10 = scmp.lt.u32.totalorder %s1190_s10, %s1779_s3 }
  0x2f   : > { %p1193_p2 = pnand %p1191_p1, %p1507_p13 }
  0x31   : > { %p1194_p6 = pneg %p1193_p2 }
  0x33   : > { %p1199_p3 = pnand %p1197_p10, %p1194_p6 }
  0x35   : > { %1202 = shalt.err (!%p1199_p3)
}
  0x36   : > { %s1203_s15 = scalar_lea.vmem %s1495_s18, 2048  ;;  %p1211_p12 = scmp.lt.s32.totalorder %s1495_s18, %s1495_s18 }
  0x37   : > { %p1204_p5 = scmp.ne.s32.totalorder %s1495_s18, %s1203_s15  ;;  %p1212_p0 = scmp.lt.s32.totalorder %s1203_s15, %s1203_s15 }
  0x39   : > { %p1206_p7 = pnand %p1204_p5, %p1507_p13  ;;  %p1213_p1 = por %p1212_p0, %p1211_p12 }
  0x3b   : > { %p1207_p9 = pneg %p1206_p7 }
  0x3d   : > { %p1214_p2 = pnand %p1213_p1, %p1207_p9 }
  0x3f   : > { %1217 = shalt.err (!%p1214_p2)
}
  0x40   : > { %1099 = dma.hbm_to_vmem [thread:$0]  (!%p1491_p11), %s1779_s3, 2048, %s1495_s18, [#allocation6], %s1387_s19, %s1387_s19, %s1388_s21  }
  0x41   : > { %s1218_s24 = scalar_lea.hbm %s1781_s5, 2048 }
  0x42   : > { %p1219_p6 = scmp.ne.s32.totalorder %s1781_s5, %s1218_s24  ;;  %p1225_p5 = scmp.lt.u32.totalorder %s1218_s24, %s1781_s5 }
  0x44   : > { %p1221_p10 = pnand %p1219_p6, %p1507_p13 }
  0x46   : > { %p1222_p3 = pneg %p1221_p10 }
  0x48   : > { %p1227_p7 = pnand %p1225_p5, %p1222_p3 }
  0x4a   : > { %1230 = shalt.err (!%p1227_p7)
}
  0x4b   : > { %s1231_s15 = scalar_lea.vmem %s284_s20, 2048  ;;  %p1239_p1 = scmp.lt.s32.totalorder %s284_s20, %s284_s20 }
  0x4c   : > { %p1232_p9 = scmp.ne.s32.totalorder %s284_s20, %s1231_s15  ;;  %p1240_p2 = scmp.lt.s32.totalorder %s1231_s15, %s1231_s15 }
  0x4e   : > { %p1234_p12 = pnand %p1232_p9, %p1507_p13  ;;  %p1241_p4 = por %p1240_p2, %p1239_p1 }
  0x50   : > { %p1235_p0 = pneg %p1234_p12 }
  0x52   : > { %p1242_p8 = pnand %p1241_p4, %p1235_p0 }
  0x54   : > { %1245 = shalt.err (!%p1242_p8)
}
  0x55   : > { %1102 = dma.hbm_to_vmem [thread:$0]  (!%p1491_p11), %s1781_s5, 2048, %s284_s20, [#allocation9], %s1387_s19, %s1387_s19, %s1388_s21  }
  0x56   : > { %s1580_s26 = sadd.s32 1, %s1382_s30   ;;  %s37_s12 = sadd.s32 1, %s1378_s29 }
  0x57   : > { %s34_s16 = ssub.s32 %s1382_s30, %s1580_s26  ;;  %p44_p8 = scmp.ne.s32.totalorder %s1378_s29, %s1374_s28 }
  0x58   : > { %p35_p4 = scmp.eq.s32.totalorder %s34_s16, 0  ;;  %p45_p13 = scmp.eq.s32.totalorder %s1382_s30, 0 }
  0x59   : > { %p1117_p6 = scmp.lt.s32.totalorder %s1382_s30, 2  ;;  %p1797_p3 = scmp.eq.s32.totalorder %s1461_s9, 1 }
  0x5a   : > { %s1590_s22 = scalar_select %p35_p4, %s1378_s29, %s37_s12  }
  0x5b   : > { %p46_p10 = por %p45_p13, %p44_p8  ;;  %p1594_p5 = por %p1797_p3, %p44_p8 }
  0x5c   : > { %s300_s24 = sand.u32 1, %s1378_s29   ;;  %s830_s25 = sshll.u32 %s1382_s30, 7 }
  0x5d   : > { %s829_s20 = sshll.u32 %s300_s24, 3  ;;  %s1603_s10 = scalar_lea.hbm %s1776_s0, %s830_s25 }
  0x5e   : > { %s304_s14 = scalar_lea.vmem [#allocation2], %s829_s20  ;;  %p1605_p11 = pnand %p1117_p6, %p46_p10 }
  0x5f   : > { %s311_s17 = sshll.u32 %s304_s14, 4  ;;  %s301_s18 = scalar_lea.sflag [#allocation3], %s300_s24  ;;  %s1609_s17 = int_to_ptr.vmem [resolvable:$true] %s311_s17 }
  0x60   : > { %s1246_s27 = scalar_lea.hbm %s1603_s10, 128  ;;  %p1248_p9 = pneg %p1605_p11 }
  0x61   : > { %p1247_p7 = scmp.ne.s32.totalorder %s1603_s10, %s1246_s27  ;;  %s1251_s25 = scalar_lea.hbm %s1776_s0, 256 }
  0x62   : > { %p1252_p1 = scmp.lt.u32.totalorder %s1603_s10, %s1776_s0  ;;  %p1253_p2 = scmp.lt.u32.totalorder %s1251_s25, %s1246_s27 }
  0x63   : > { %p1249_p12 = pnand %p1248_p9, %p1247_p7  ;;  %p1255_p8 = scmp.lt.u32.totalorder %s1246_s27, %s1603_s10 }
  0x64   : > { %p1254_p4 = por %p1253_p2, %p1252_p1 }
  0x65   : > { %p1250_p0 = pneg %p1249_p12 }
  0x66   : > { %p1256_p13 = por %p1255_p8, %p1254_p4 }
  0x68   : > { %p1257_p6 = pnand %p1256_p13, %p1250_p0 }
  0x6a   : > { %1260 = shalt.err (!%p1257_p6)
}
  0x6b   : > { %s1261_s24 = scalar_lea.vmem %s1609_s17, 128  ;;  %s1389_s21 = smov [#allocation2]  }
  0x6c   : > { %p1262_p10 = scmp.ne.s32.totalorder %s1609_s17, %s1261_s24  ;;  %s1266_s14 = sshll.u32 %s1389_s21, 4  ;;  %s1267_s14 = int_to_ptr.vmem [resolvable:$false] %s1266_s14 }
  0x6d   : > { %s1268_s16 = scalar_lea.vmem %s1267_s14, 256  ;;  %p1269_p12 = scmp.lt.s32.totalorder %s1609_s17, %s1267_s14 }
  0x6e   : > { %p1264_p3 = pnand %p1262_p10, %p1248_p9  ;;  %p1270_p1 = scmp.lt.s32.totalorder %s1268_s16, %s1261_s24 }
  0x70   : > { %p1265_p7 = pneg %p1264_p3  ;;  %p1271_p2 = por %p1270_p1, %p1269_p12 }
  0x72   : > { %p1272_p4 = pnand %p1271_p2, %p1265_p7 }
  0x74   : > { %1275 = shalt.err (!%p1272_p4)
}
  0x75   : > { %1106 = dma.hbm_to_vmem [thread:$0]  (!%p1605_p11), %s1603_s10, 128, %s1609_s17, %s301_s18  }
  0x76   : > { %p1800_p0 = scmp.ne.s32.totalorder %s1794_s13, 0 }
  0x77   : > { %s1639_s27 = sand.u32 (!%p1800_p0), 1, %s1374_s28   ;;  %p1801_p9 = scmp.ne.s32.totalorder (!%p1800_p0), %s1791_s11, 0 }
  0x78   : > { %320 = sbr.rel (%p1800_p0) target bundleno = 830 (0x33e), region = 48  ;;  %s1642_s12 = sshll.u32 (!%p1800_p0), %s1639_s27, 3 }
  0x79   : > { %s323_s25 = scalar_lea.sflag (!%p1800_p0), [#allocation3], %s1639_s27  ;;  %s326_s20 = scalar_lea.vmem (!%p1800_p0), [#allocation2], %s1642_s12 }
  0x7f   : > { %1349 = dma.done.wait (%p1801_p9), %s323_s25, 128  }
  0x80   : > { %1351 = vsyncadd (%p1801_p9), %s323_s25, 4294967168  ;;  %p1802_p11 = scmp.eq.s32.totalorder %s1461_s9, 0 }
  0x82   : > { %1353 = dma.done.wait (%p1802_p11), [#allocation6], 4096   ;;  %p1803_p8 = pmov %p1802_p11 }
  0x84   : > { %1355 = vsyncadd (%p1803_p8), [#allocation6], 4294963200  ;;  %p1804_p13 = pmov %p1803_p8 }
  0x85   : > { %p1805_p6 = pmov %p1803_p8 }
  0x86   : > { %1357 = dma.done.wait (%p1804_p13), [#allocation9], 2048  }
  0x87   : > { %1359 = vsyncadd (%p1805_p6), [#allocation9], 4294965248  ;;  %v1390_v0 = vmov 0.0|0.0   ;;  %vm1391_vm0 = vmmov 0   ;;  %v1392_v1 = vmov 0.0   ;;  %v377_v2 = vld [vmem:[#allocation5] sm:$0xff] }
  0x88   : > { %1003 = vmatprep.subr.bf16.mxu0 %v1390_v0  ;;  %930 = vmatprep.mubr.msk.f32.mxu0 %vm1391_vm0, %v1392_v1  ;;  %v378_v3 = vld [vmem:[#allocation5 + $0x8] sm:$0xff]  ;;  %v379_v4 = vld [vmem:[#allocation5 + $0x10] sm:$0xff]  ;;  %v380_v6 = vld [vmem:[#allocation5 + $0x18] sm:$0xff]  ;;  %s375_s15 = scalar_lea.vmem [#allocation11], %s1642_s12  ;;  %s843_s18 = sshll.u32 %s1461_s9, 7 }
  0x89   : > { %1027 = vmatprep.subr.bf16.mxu1 %v1390_v0  ;;  %965 = vmatprep.mubr.msk.f32.mxu1 %vm1391_vm0, %v1392_v1  ;;  %v1004_v5 = vpack.c.bf16 %v378_v3, %v377_v2  ;;  %v1007_v7 = vpack.c.bf16 %v380_v6, %v379_v4  ;;  %v381_v8 = vld [vmem:[#allocation5 + $0x20] sm:$0xff]  ;;  %v382_v9 = vld [vmem:[#allocation5 + $0x28] sm:$0xff]  ;;  %v473_v12 = vld [vmem:[#allocation7 + $0x10] sm:$0xff]  ;;  %s1703_s21 = scalar_lea.hbm %s1784_s8, %s843_s18  ;;  %s692_s14 = sshll.u32 %s375_s15, 4  ;;  %s693_s14 = int_to_ptr.vmem [resolvable:$true] %s692_s14 }
  0x8a   : > { %v471_v10 = vld [vmem:[#allocation7] sm:$0xff]  ;;  %v472_v11 = vld [vmem:[#allocation7 + $0x8] sm:$0xff]  ;;  %v474_v13 = vld [vmem:[#allocation7 + $0x18] sm:$0xff]  ;;  %v1010_v14 = vpack.c.bf16 %v382_v9, %v381_v8  ;;  %s666_s16 = scalar_lea.sflag [#allocation12], %s1639_s27  ;;  %s1276_s25 = scalar_lea.vmem %s693_s14, 128 }
  0x8b   : > { %1005 = vmatpush3.bf16.msra.mxu0 %v1004_v5  ;;  %v1028_v15 = vpack.c.bf16 %v472_v11, %v471_v10  ;;  %v383_v16 = vld [vmem:[#allocation5 + $0x30] sm:$0xff]  ;;  %v384_v17 = vld [vmem:[#allocation5 + $0x38] sm:$0xff]  ;;  %v1031_v18 = vpack.c.bf16 %v474_v13, %v473_v12  ;;  %v475_v19 = vld [vmem:[#allocation7 + $0x20] sm:$0xff]  ;;  %p1277_p10 = scmp.ne.s32.totalorder %s693_s14, %s1276_s25 }
  0x8c   : > { %1006 = vmatprep.subr.bf16.mxu0 %v1390_v0  ;;  %v476_v20 = vld [vmem:[#allocation7 + $0x28] sm:$0xff]  ;;  %v1013_v21 = vpack.c.bf16 %v384_v17, %v383_v16  ;;  %v385_v22 = vld [vmem:[#allocation5 + $0x40] sm:$0xff]  ;;  %v477_v25 = vld [vmem:[#allocation7 + $0x30] sm:$0xff] }
  0x8d   : > { %1029 = vmatpush3.bf16.msra.mxu1 %v1028_v15  ;;  %v386_v23 = vld [vmem:[#allocation5 + $0x48] sm:$0xff]  ;;  %v1034_v24 = vpack.c.bf16 %v476_v20, %v475_v19  ;;  %v478_v26 = vld [vmem:[#allocation7 + $0x38] sm:$0xff]  ;;  %v387_v28 = vld [vmem:[#allocation5 + $0x50] sm:$0xff]  ;;  %p1278_p3 = pnand %p1277_p10, %p1594_p5 }
  0x8e   : > { %1030 = vmatprep.subr.bf16.mxu1 %v1390_v0  ;;  %v1016_v27 = vpack.c.bf16 %v386_v23, %v385_v22  ;;  %v388_v29 = vld [vmem:[#allocation5 + $0x58] sm:$0xff]  ;;  %v1037_v30 = vpack.c.bf16 %v478_v26, %v477_v25  ;;  %v479_v31 = vld [vmem:[#allocation7 + $0x40] sm:$0xff]  ;;  %v480_v32 = vld [vmem:[#allocation7 + $0x48] sm:$0xff] }
  0x8f   : > { %1008 = vmatpush3.bf16.msra.mxu0 %v1007_v7  ;;  %v1019_v33 = vpack.c.bf16 %v388_v29, %v387_v28  ;;  %v389_v34 = vld [vmem:[#allocation5 + $0x60] sm:$0xff]  ;;  %v390_v35 = vld [vmem:[#allocation5 + $0x68] sm:$0xff]  ;;  %v1040_v36 = vpack.c.bf16 %v480_v32, %v479_v31  ;;  %v481_v37 = vld [vmem:[#allocation7 + $0x50] sm:$0xff]  ;;  %p1279_p7 = pneg %p1278_p3 }
  0x90   : > { %1009 = vmatprep.subr.bf16.mxu0 %v1390_v0  ;;  %v482_v38 = vld [vmem:[#allocation7 + $0x58] sm:$0xff]  ;;  %v1022_v39 = vpack.c.bf16 %v390_v35, %v389_v34  ;;  %v391_v40 = vld [vmem:[#allocation5 + $0x70] sm:$0xff]  ;;  %v483_v43 = vld [vmem:[#allocation7 + $0x60] sm:$0xff] }
  0x91   : > { %1032 = vmatpush3.bf16.msra.mxu1 %v1031_v18  ;;  %v392_v41 = vld [vmem:[#allocation5 + $0x78] sm:$0xff]  ;;  %v1043_v42 = vpack.c.bf16 %v482_v38, %v481_v37  ;;  %v484_v44 = vld [vmem:[#allocation7 + $0x68] sm:$0xff]  ;;  %v485_v48 = vld [vmem:[#allocation7 + $0x70] sm:$0xff] }
  0x92   : > { %1033 = vmatprep.subr.bf16.mxu1 %v1390_v0  ;;  %v1025_v45 = vpack.c.bf16 %v392_v41, %v391_v40  ;;  %v1046_v46 = vpack.c.bf16 %v484_v44, %v483_v43  ;;  %v376_v47 = vld [vmem:[%s326_s20] sm:$0xff]  ;;  %v566_v51 = vld [vmem:[#allocation8] sm:$0xff]  ;;  %v567_v52 = vld [vmem:[#allocation8 + $0x8] sm:$0xff]  ;;  %s1393_s20 = smov [#allocation11]  }
  0x93   : > { %1011 = vmatpush3.bf16.msra.mxu0 %v1010_v14  ;;  %v486_v49 = vld [vmem:[#allocation7 + $0x78] sm:$0xff]  ;;  %v568_v53 = vld [vmem:[#allocation8 + $0x10] sm:$0xff]  ;;  %v1052_v54 = vpack.c.bf16 %v567_v52, %v566_v51  ;;  %v570_v57 = vld [vmem:[#allocation8 + $0x20] sm:$0xff]  ;;  %s1280_s11 = sshll.u32 %s1393_s20, 4  ;;  %s1281_s11 = int_to_ptr.vmem [resolvable:$false] %s1280_s11 }
  0x94   : > { %1012 = vmatprep.subr.bf16.mxu0 %v1390_v0  ;;  %v1049_v50 = vpack.c.bf16 %v486_v49, %v485_v48  ;;  %v569_v55 = vld [vmem:[#allocation8 + $0x18] sm:$0xff]  ;;  %v571_v58 = vld [vmem:[#allocation8 + $0x28] sm:$0xff]  ;;  %v572_v60 = vld [vmem:[#allocation8 + $0x30] sm:$0xff]  ;;  %s1282_s13 = scalar_lea.vmem %s1281_s11, 256  ;;  %p1283_p12 = scmp.lt.s32.totalorder %s693_s14, %s1281_s11 }
  0x95   : > { %1035 = vmatpush3.bf16.msra.mxu1 %v1034_v24  ;;  %v1055_v56 = vpack.c.bf16 %v569_v55, %v568_v53  ;;  %v1058_v59 = vpack.c.bf16 %v571_v58, %v570_v57  ;;  %v573_v61 = vld [vmem:[#allocation8 + $0x38] sm:$0xff]  ;;  %v574_v63 = vld [vmem:[#allocation8 + $0x40] sm:$0xff]  ;;  %v576_v3 = vld [vmem:[#allocation8 + $0x50] sm:$0xff]  ;;  %p1284_p1 = scmp.lt.s32.totalorder %s1282_s13, %s1276_s25 }
  0x96   : > { %1036 = vmatprep.subr.bf16.mxu1 %v1390_v0  ;;  %v1061_v62 = vpack.c.bf16 %v573_v61, %v572_v60  ;;  %v577_v4 = vld [vmem:[#allocation8 + $0x58] sm:$0xff]  ;;  %v578_v6 = vld [vmem:[#allocation8 + $0x60] sm:$0xff]  ;;  %v579_v7 = vld [vmem:[#allocation8 + $0x68] sm:$0xff] }
  0x97   : > { %1014 = vmatpush3.bf16.msra.mxu0 %v1013_v21  ;;  %v1067_v5 = vpack.c.bf16 %v577_v4, %v576_v3  ;;  %v1070_v8 = vpack.c.bf16 %v579_v7, %v578_v6  ;;  %v838_v9 = vld [vmem:[%s1778_s2] ss:$0 sm:$0xff]  ;;  %v581_v15 = vld [vmem:[#allocation8 + $0x78] sm:$0xff]  ;;  %p1285_p2 = por %p1284_p1, %p1283_p12 }
  0x98   : > { %1015 = vmatprep.subr.bf16.mxu0 %v1390_v0  ;;  %v580_v14 = vld [vmem:[#allocation8 + $0x70] sm:$0xff] }
  0x99   : > { %1038 = vmatpush3.bf16.msra.mxu1 %v1037_v30  ;;  %v1073_v16 = vpack.c.bf16 %v581_v15, %v580_v14  ;;  %p1286_p4 = pnand %p1285_p2, %p1279_p7 }
  0x9a   : > { %1039 = vmatprep.subr.bf16.mxu1 %v1390_v0 }
  0x9b   : > { %1017 = vmatpush3.bf16.msra.mxu0 %v1016_v27 }
  0x9c   : > { %1018 = vmatprep.subr.bf16.mxu0 %v1390_v0 }
  0x9d   : > { %1041 = vmatpush3.bf16.msra.mxu1 %v1040_v36 }
  0x9e   : > { %1042 = vmatprep.subr.bf16.mxu1 %v1390_v0 }
  0x9f   : > { %1020 = vmatpush3.bf16.msra.mxu0 %v1019_v33 }
  0xa0   : > { %1021 = vmatprep.subr.bf16.mxu0 %v1390_v0 }
  0xa1   : > { %1044 = vmatpush3.bf16.msra.mxu1 %v1043_v42 }
  0xa2   : > { %1045 = vmatprep.subr.bf16.mxu1 %v1390_v0 }
  0xa3   : > { %1023 = vmatpush3.bf16.msra.mxu0 %v1022_v39 }
  0xa4   : > { %1024 = vmatprep.subr.bf16.mxu0 %v1390_v0 }
  0xa5   : > { %1047 = vmatpush3.bf16.msra.mxu1 %v1046_v46 }
  0xa6   : > { %1048 = vmatprep.subr.bf16.mxu1 %v1390_v0 }
  0xa7   : > { %1026 = vmatpush3.bf16.msra.mxu0 %v1025_v45 }
  0xa8   : > { %1051 = vmatprep.subr.bf16.mxu0 %v1390_v0 }
  0xa9   : > { %1050 = vmatpush3.bf16.msra.mxu1 %v1049_v50 }
  0xaa   : > { %931 = vmatmul.mubr.f32.vlgmr.msra.gmra.mrb[0].mxu0 %v376_v47 }
  0xab   : > { %1000 = vmatprep.mubr.msk.f32.mxu0 %vm1391_vm0, %v1392_v1  ;;  %1053 = vmatpush3.bf16.msra.mxu0 %v1052_v54  ;;  %v575_v1 = vld [vmem:[#allocation8 + $0x48] sm:$0xff] }
  0xac   : > { %1054 = vmatprep.subr.bf16.mxu0 %v1390_v0  ;;  %v1064_v2 = vpack.c.bf16 %v575_v1, %v574_v63 }
  0xaf   : > { %1056 = vmatpush3.bf16.msra.mxu0 %v1055_v56 }
  0xb0   : > { %1057 = vmatprep.subr.bf16.mxu0 %v1390_v0 }
  0xb3   : > { %1059 = vmatpush3.bf16.msra.mxu0 %v1058_v59 }
  0xb4   : > { %1060 = vmatprep.subr.bf16.mxu0 %v1390_v0 }
  0xb7   : > { %1062 = vmatpush3.bf16.msra.mxu0 %v1061_v62 }
  0xb8   : > { %1063 = vmatprep.subr.bf16.mxu0 %v1390_v0 }
  0xbb   : > { %1065 = vmatpush3.bf16.msra.mxu0 %v1064_v2 }
  0xbc   : > { %1066 = vmatprep.subr.bf16.mxu0 %v1390_v0 }
  0xbf   : > { %1068 = vmatpush3.bf16.msra.mxu0 %v1067_v5 }
  0xc0   : > { %1069 = vmatprep.subr.bf16.mxu0 %v1390_v0 }
  0xc3   : > { %1071 = vmatpush3.bf16.msra.mxu0 %v1070_v8 }
  0xc4   : > { %1072 = vmatprep.subr.bf16.mxu0 %v1390_v0  ;;  %v839_v0 = vld [vmem:[%s1780_s4] ss:$0 sm:$0xff] }
  0xc7   : > { %1074 = vmatpush3.bf16.msra.mxu0 %v1073_v16 }
 0x17d   : > { %v466_v10 = vpop.f32.mrb[0].mxu0 }
 0x17e   : > { %v467_v11 = vadd.f32 %v838_v9, %v466_v10  ;;  %v932_v12 = vpop.f32.mrb[1].mxu0 }
 0x180   : > { %v470_v13 = vmax.f32 %v467_v11, 0.0 }
 0x182   : > { %966 = vmatmul.mubr.f32.vlgmr.msra.gmra.mrb[0].mxu1 %v470_v13 }
 0x255   : > { %v560_v17 = vpop.f32.mrb[0].mxu1 }
 0x256   : > { %v561_v18 = vadd.f32 %v839_v0, %v560_v17  ;;  %v967_v19 = vpop.f32.mrb[1].mxu1 }
 0x258   : > { %v564_v20 = vmax.f32 %v561_v18, 0.0 }
 0x25a   : > { %565 = vst [vmem:[%s375_s15] sm:$0xff] %v564_v20  ;;  %1001 = vmatmul.mubr.f32.vlgmr.msra.gmra.mrb[2].mxu0 %v564_v20 }
 0x25b   : > { %1289 = shalt.err (!%p1286_p4)
}
 0x25c   : > { %s1290_s10 = scalar_lea.hbm %s1703_s21, 128  ;;  %s1294_s19 = scalar_lea.hbm %s1784_s8, 256 }
 0x25d   : > { %p1291_p0 = scmp.ne.s32.totalorder %s1703_s21, %s1290_s10  ;;  %p1295_p8 = scmp.lt.u32.totalorder %s1703_s21, %s1784_s8 }
 0x25e   : > { %p1296_p13 = scmp.lt.u32.totalorder %s1294_s19, %s1290_s10  ;;  %p1298_p10 = scmp.lt.u32.totalorder %s1290_s10, %s1703_s21 }
 0x25f   : > { %p1292_p9 = pnand %p1291_p0, %p1594_p5 }
 0x260   : > { %p1297_p6 = por %p1296_p13, %p1295_p8 }
 0x261   : > { %p1293_p11 = pneg %p1292_p9 }
 0x262   : > { %p1299_p3 = por %p1298_p10, %p1297_p6 }
 0x264   : > { %p1300_p7 = pnand %p1299_p3, %p1293_p11 }
 0x266   : > { %1303 = shalt.err (!%p1300_p7)
}
 0x267   : > { %1090 = dma.vmem_to_hbm [thread:$0]  (%p1594_p5), %s693_s14, 128, %s1703_s21, %s666_s16   ;;  %v840_v21 = vld [vmem:[%s1782_s6] ss:$0 sm:$0xff] }
 0x268   : > { %s368_s13 = scalar_lea.vmem [#allocation10], %s1642_s12  ;;  %s1732_s19 = scalar_lea.hbm %s1783_s7, %s843_s18 }
 0x269   : > { %s679_s17 = sshll.u32 %s368_s13, 4  ;;  %s661_s21 = scalar_lea.sflag [#allocation4], %s1639_s27  ;;  %s1734_s17 = int_to_ptr.vmem [resolvable:$true] %s679_s17 }
 0x26a   : > { %s1304_s14 = scalar_lea.vmem %s1734_s17, 128  ;;  %s1394_s12 = smov [#allocation10]  }
 0x26b   : > { %p1305_p12 = scmp.ne.s32.totalorder %s1734_s17, %s1304_s14  ;;  %s1308_s16 = sshll.u32 %s1394_s12, 4  ;;  %s1309_s16 = int_to_ptr.vmem [resolvable:$false] %s1308_s16 }
 0x26c   : > { %s1310_s9 = scalar_lea.vmem %s1309_s16, 256  ;;  %p1311_p4 = scmp.lt.s32.totalorder %s1734_s17, %s1309_s16 }
 0x26d   : > { %p1306_p1 = pnand %p1305_p12, %p1594_p5  ;;  %p1312_p0 = scmp.lt.s32.totalorder %s1310_s9, %s1304_s14 }
 0x26f   : > { %p1307_p2 = pneg %p1306_p1  ;;  %p1313_p9 = por %p1312_p0, %p1311_p4 }
 0x271   : > { %p1314_p11 = pnand %p1313_p9, %p1307_p2 }
 0x32d   : > { %v655_v22 = vpop.f32.mrb[2].mxu0 }
 0x32e   : > { %v656_v23 = vadd.f32 %v840_v21, %v655_v22  ;;  %v1002_v24 = vpop.f32.mrb[3].mxu0 }
 0x330   : > { %659 = vst [vmem:[%s368_s13] sm:$0xff] %v656_v23 }
 0x331   : > { %1317 = shalt.err (!%p1314_p11)
}
 0x332   : > { %s1318_s27 = scalar_lea.hbm %s1732_s19, 128  ;;  %s1322_s20 = scalar_lea.hbm %s1783_s7, 256 }
 0x333   : > { %p1319_p8 = scmp.ne.s32.totalorder %s1732_s19, %s1318_s27  ;;  %p1323_p10 = scmp.lt.u32.totalorder %s1732_s19, %s1783_s7 }
 0x334   : > { %p1324_p3 = scmp.lt.u32.totalorder %s1322_s20, %s1318_s27  ;;  %p1326_p12 = scmp.lt.u32.totalorder %s1318_s27, %s1732_s19 }
 0x335   : > { %p1320_p13 = pnand %p1319_p8, %p1594_p5 }
 0x336   : > { %p1325_p7 = por %p1324_p3, %p1323_p10 }
 0x337   : > { %p1321_p6 = pneg %p1320_p13 }
 0x338   : > { %p1327_p1 = por %p1326_p12, %p1325_p7 }
 0x33a   : > { %p1328_p2 = pnand %p1327_p1, %p1321_p6 }
 0x33c   : > { %1331 = shalt.err (!%p1328_p2)
}
 0x33d   : > { %1089 = dma.vmem_to_hbm [thread:$0]  (%p1594_p5), %s1734_s17, 128, %s1732_s19, %s661_s21  }
 0x33e PF: > { %s1806_s13 = sld [smem:[#allocation18_spill]]  ;;  %s1807_s10 = sld [smem:[#allocation19_spill]] }
 0x33f   : > { %p1809_p0 = scmp.ge.s32.totalorder %s1382_s30, 2 }
 0x344   : > { %s704_s15 = sand.u32 1, %s1806_s13   ;;  %p1808_p4 = scmp.ne.s32.totalorder %s1807_s10, 0 }
 0x345   : > { %s705_s14 = scalar_lea.sflag [#allocation4], %s704_s15 }
 0x346   : > { %p1108_p9 = pnand %p1809_p0, %p1808_p4 }
 0x348   : > { %1361 = dma.done.wait (!%p1108_p9), %s705_s14, 128  }
 0x349   : > { %1363 = vsyncadd (!%p1108_p9), %s705_s14, 4294967168  ;;  %s714_s12 = scalar_lea.sflag [#allocation12], %s704_s15 }
 0x34a   : > { %1365 = dma.done.wait (!%p1108_p9), %s714_s12, 128  }
 0x34b   : > { %1367 = vsyncadd (!%p1108_p9), %s714_s12, 4294967168  ;;  %p27_p5 = scmp.ge.s32.totalorder %s1580_s26, 4   ;;  %s1810_s27 = smov %s1374_s28 }
 0x34c   : > { %s1811_s28 = smov %s1378_s29  ;;  %s1812_s29 = smov %s1590_s22 }
 0x34d   : > { %s1813_s30 = smov %s1580_s26  ;;  %29 = sbr.rel (!%p27_p5) target bundleno = 9 (0x9), region = 122 }
 0x354   :  { %719 = vsyncpa [#allocation3], 1 }
 0x355   :  { %721 = vsyncpa [#allocation3 + $0x1], 1 }
 0x356   :  { %722 = vsyncpa [#allocation6], 1 }
 0x357   :  { %723 = vsyncpa [#allocation9], 1 }
 0x358   :  { %724 = vsyncpa [#allocation4], 1 }
 0x359   :  { %726 = vsyncpa [#allocation4 + $0x1], 1 }
 0x35a   :  { %727 = vsyncpa [#allocation12], 1 }
 0x35b   :  { %729 = vsyncpa [#allocation12 + $0x1], 1 }

</bundles_post_ra>
